<compile_context>
chip_gen: v7x
topology: tpu7x:2x2x1
jax: 0.10.0
libtpu: 0.0.40
codegen_flags: <defaults>
</compile_context>

<pallas_src>
import functools

import jax
import jax.numpy as jnp
from jax import lax
from jax.experimental import pallas as pl
from jax.experimental.pallas import tpu as pltpu

NUM_STAGES = 3           # Detic cascade stages
NORM_TEMP = 50.0         # ZeroShotClassifier norm_temperature
NORM_EPS = 1e-12         # F.normalize eps (applied to the norm)
LANE = 128
DELTA_PAD = LANE         # bbox deltas (4) padded to one full lane group


def _round_up(v, m):
    return (v + m - 1) // m * m


def _detic_head_kernel(x_ref, ps_ref, wall_ref, ball_ref, zsw_ref,
                       scores_ref, deltas_ref, feats_ref, *, d_pad, num_fg):
    """Fused cascade zero-shot classification head for one tile of proposals.

    x_ref     : (TN, Din_p)      pooled box features, bf16 (shared by stages)
    ps_ref    : (TN, 1)          proposal scores, f32
    wall_ref  : (Din_p, 3*Dp+128) fused [stage0|stage1|stage2|bbox] weights, bf16
    ball_ref  : (1, 3*Dp+128)    fused biases, f32
    zsw_ref   : (Dp, Cp)         L2-normalized zero-shot weight (+ zero bg col,
                                 + zero padding columns), bf16
    scores_ref: (TN, Cp)         final fused scores, f32
    deltas_ref: (TN, 128)        last-stage class-agnostic deltas (cols 0:4)
    feats_ref : (TN, Dp)         last-stage clip features (x_features)
    """
    x = x_ref[...]                                          # (TN, Din_p) bf16

    # One wide MXU pass covering all three cls_score.linear layers and the
    # last-stage bbox_pred.  f32 accumulation, bias add in f32.
    proj = jnp.dot(x, wall_ref[...], preferred_element_type=jnp.float32)
    proj = proj + ball_ref[...]                             # (TN, 3*Dp+128) f32

    zsw = zsw_ref[...]                                      # (Dp, Cp) bf16
    acc = jnp.zeros(scores_ref.shape, dtype=jnp.float32)
    for k in range(NUM_STAGES):                             # static 3-iter loop
        feat = proj[:, k * d_pad:(k + 1) * d_pad]           # 128-aligned slice
        # norm_temperature * F.normalize(feat, p=2, dim=1)
        #   1 / max(||f||, eps) == rsqrt(max(sumsq, eps^2))  -> EUP slot
        sumsq = jnp.sum(feat * feat, axis=-1, keepdims=True)
        scale = NORM_TEMP * lax.rsqrt(jnp.maximum(sumsq, NORM_EPS * NORM_EPS))
        xn = (feat * scale).astype(zsw.dtype)
        logits = jnp.dot(xn, zsw, preferred_element_type=jnp.float32)
        # predict_probs (use_sigmoid_ce=True) -> sigmoid
        acc = acc + jax.nn.sigmoid(logits)

    # average over cascade stages
    scores = acc * (1.0 / NUM_STAGES)
    # mult_proposal_score: sqrt(score * proposal_score)
    scores = jnp.sqrt(scores * ps_ref[...])
    # one_class_per_proposal: keep only classes equal to the foreground max
    # (foreground = first num_fg columns; excludes bg column and lane padding)
    col = lax.broadcasted_iota(jnp.int32, scores.shape, 1)
    fg_max = jnp.max(jnp.where(col < num_fg, scores, -1.0),
                     axis=1, keepdims=True)
    scores = scores * (scores == fg_max).astype(jnp.float32)

    scores_ref[...] = scores
    # clip features = last-stage linear output (pre-normalization)
    feats_ref[...] = proj[:, (NUM_STAGES - 1) * d_pad:NUM_STAGES * d_pad]
    # bbox_pred of the last cascade stage (class-agnostic; real deltas in 0:4)
    deltas_ref[...] = proj[:, NUM_STAGES * d_pad:]


@functools.partial(jax.jit, static_argnames=("tile_n",))
def detic_head(x, proposal_scores, w_cls, b_cls, zs_weight, w_bbox, b_bbox,
               tile_n=128):
    """Runs the fused Detic cascade zero-shot head.

    x               : (N, Din) f32 pooled box features
    proposal_scores : (N, 1)   f32
    w_cls           : (3, Din, D)  per-stage cls_score.linear weights
    b_cls           : (3, D)
    zs_weight       : (D, C+1)  column-normalized, zero background column
    w_bbox          : (Din, 4)  last-stage class-agnostic bbox_pred
    b_bbox          : (1, 4)
    returns (scores (N, C+1), deltas (N, 4), clip_features (N, D))

    For realistic proposal counts (N ~ 1k-2k) use tile_n=256..512; keep
    N_padded/tile_n >= 2 so both v7x TensorCores get work.
    """
    N, Din = x.shape
    D = w_cls.shape[-1]
    Cp1 = zs_weight.shape[-1]
    nbb = w_bbox.shape[-1]

    n_p = _round_up(N, tile_n)
    din_p = _round_up(Din, LANE)
    d_p = _round_up(D, LANE)
    c_p = _round_up(Cp1, LANE)
    w_tot = NUM_STAGES * d_p + DELTA_PAD

    # Lane-dense, bf16 MXU operands (zero padding is exact: it contributes
    # nothing to dots, norms, or the masked foreground max).
    x_p = jnp.pad(x, ((0, n_p - N), (0, din_p - Din))).astype(jnp.bfloat16)
    ps_p = jnp.pad(proposal_scores.astype(jnp.float32),
                   ((0, n_p - N), (0, 0)), constant_values=1.0)

    w_cls_p = jnp.pad(w_cls, ((0, 0), (0, din_p - Din), (0, d_p - D)))
    w_bbox_p = jnp.pad(w_bbox, ((0, din_p - Din), (0, DELTA_PAD - nbb)))
    w_all = jnp.concatenate(
        [w_cls_p[k] for k in range(NUM_STAGES)] + [w_bbox_p],
        axis=1).astype(jnp.bfloat16)                         # (din_p, w_tot)

    b_cls_p = jnp.pad(b_cls, ((0, 0), (0, d_p - D))).reshape(1, -1)
    b_bbox_p = jnp.pad(b_bbox.reshape(1, -1), ((0, 0), (0, DELTA_PAD - nbb)))
    b_all = jnp.concatenate([b_cls_p, b_bbox_p], axis=1).astype(jnp.float32)

    zsw_p = jnp.pad(zs_weight,
                    ((0, d_p - D), (0, c_p - Cp1))).astype(jnp.bfloat16)

    grid = (n_p // tile_n,)
    kernel = functools.partial(_detic_head_kernel, d_pad=d_p, num_fg=Cp1 - 1)

    out_shapes = (
        jax.ShapeDtypeStruct((n_p, c_p), jnp.float32),
        jax.ShapeDtypeStruct((n_p, DELTA_PAD), jnp.float32),
        jax.ShapeDtypeStruct((n_p, d_p), jnp.float32),
    )
    grid_spec = pltpu.PrefetchScalarGridSpec(
        num_scalar_prefetch=0,
        grid=grid,
        in_specs=[
            pl.BlockSpec((tile_n, din_p), lambda i: (i, 0)),   # x
            pl.BlockSpec((tile_n, 1), lambda i: (i, 0)),       # proposal scores
            # grid-invariant weight blocks (constant index_map -> no re-DMA)
            pl.BlockSpec((din_p, w_tot), lambda i: (0, 0)),    # fused W
            pl.BlockSpec((1, w_tot), lambda i: (0, 0)),        # fused b
            pl.BlockSpec((d_p, c_p), lambda i: (0, 0)),        # zs weight
        ],
        out_specs=[
            pl.BlockSpec((tile_n, c_p), lambda i: (i, 0)),
            pl.BlockSpec((tile_n, DELTA_PAD), lambda i: (i, 0)),
            pl.BlockSpec((tile_n, d_p), lambda i: (i, 0)),
        ],
    )
    scores, deltas, feats = pl.pallas_call(
        kernel,
        out_shape=out_shapes,
        grid_spec=grid_spec,
        compiler_params=pltpu.CompilerParams(
            dimension_semantics=("parallel",),
            vmem_limit_bytes=48 * 1024 * 1024),
    )(x_p, ps_p, w_all, b_all, zsw_p)

    return scores[:N, :Cp1], deltas[:N, :nbb], feats[:N, :D]


def reference(x, ps, w_cls, b_cls, zsw, w_bbox, b_bbox):
    """Pure-JAX reference mirroring the PyTorch forward semantics
    (with the same bf16 matmul operands / f32 accumulation as the kernel)."""
    xb = x.astype(jnp.bfloat16)
    acc = 0.0
    feat_last = None
    for k in range(NUM_STAGES):
        feat = jnp.dot(xb, w_cls[k].astype(jnp.bfloat16),
                       preferred_element_type=jnp.float32) + b_cls[k]
        sumsq = jnp.sum(feat * feat, axis=1, keepdims=True)
        scale = NORM_TEMP * lax.rsqrt(jnp.maximum(sumsq, NORM_EPS * NORM_EPS))
        logits = jnp.dot((feat * scale).astype(jnp.bfloat16),
                         zsw.astype(jnp.bfloat16),
                         preferred_element_type=jnp.float32)
        acc = acc + jax.nn.sigmoid(logits)
        feat_last = feat
    pre = jnp.sqrt(acc / NUM_STAGES * ps)
    fg_max = jnp.max(pre[:, :-1], axis=1, keepdims=True)
    scores = pre * (pre == fg_max).astype(jnp.float32)
    deltas = jnp.dot(xb, w_bbox.astype(jnp.bfloat16),
                     preferred_element_type=jnp.float32) + b_bbox
    return scores, deltas, feat_last, pre


if __name__ == "__main__":
    # small synthetic shapes consistent with the Detic box head (scaled down):
    # 256 proposals, Din=256 pooled box-head features, D=128 clip-embedding
    # dim, C=127 vocabulary classes (+1 zero background column).
    N, Din, D, C = 256, 256, 128, 127
    Cp1 = C + 1

    key = jax.random.PRNGKey(0)
    ks = jax.random.split(key, 8)

    x = jax.random.normal(ks[0], (N, Din), dtype=jnp.float32)
    proposal_scores = jax.random.uniform(ks[1], (N, 1), dtype=jnp.float32,
                                         minval=0.05, maxval=1.0)

    # per-stage cls_score.linear (Din -> D)
    w_cls = jax.random.normal(ks[2], (NUM_STAGES, Din, D),
                              dtype=jnp.float32) * 0.05
    b_cls = jax.random.normal(ks[3], (NUM_STAGES, D), dtype=jnp.float32) * 0.01

    # zero-shot classifier weight: C text embeddings of dim D ->
    # column-normalized (D, C), plus zero background column (reset_cls_test)
    text_feats = jax.random.normal(ks[4], (C, D), dtype=jnp.float32)
    zsw = text_feats.T
    zsw = zsw / jnp.maximum(jnp.linalg.norm(zsw, axis=0, keepdims=True),
                            NORM_EPS)
    zs_weight = jnp.concatenate([zsw, jnp.zeros((D, 1), jnp.float32)], axis=1)

    # last-stage class-agnostic bbox_pred (Din -> 4)
    w_bbox = jax.random.normal(ks[5], (Din, 4), dtype=jnp.float32) * 0.05
    b_bbox = jax.random.normal(ks[6], (1, 4), dtype=jnp.float32) * 0.01

    scores, deltas, feats = detic_head(
        x, proposal_scores, w_cls, b_cls, zs_weight, w_bbox, b_bbox,
        tile_n=128)
    jax.block_until_ready((scores, deltas, feats))

    r_scores, r_deltas, r_feats, r_pre = reference(
        x, proposal_scores, w_cls, b_cls, zs_weight, w_bbox, b_bbox)

    assert jnp.allclose(deltas, r_deltas, atol=2e-3, rtol=2e-3)
    assert jnp.allclose(feats, r_feats, atol=2e-3, rtol=2e-3)

    # The one-class-per-proposal mask uses exact float equality; classes tied
    # to within accumulation noise may legitimately resolve differently
    # between the Pallas MXU kernel and the XLA reference.  Compare full rows
    # only where the reference top-2 foreground margin is decisive, and the
    # per-row max everywhere.
    top = jnp.sort(r_pre[:, :-1], axis=1)
    decisive = (top[:, -1] - top[:, -2]) > 1e-4
    elem_ok = jnp.abs(scores - r_scores) <= (2e-3 + 2e-3 * jnp.abs(r_scores))
    assert bool(jnp.all(elem_ok | ~decisive[:, None]))
    assert jnp.allclose(jnp.max(scores, axis=1), jnp.max(r_scores, axis=1),
                        atol=2e-3, rtol=2e-3)

    print("KERNEL_OK")
</pallas_src>

<mosaic_0001>
module attributes {stable_mosaic.version = 11 : i64} {
  func.func @_detic_head_kernel(%arg0: i32, %arg1: memref<128x256xbf16, #tpu.memory_space<vmem>>, %arg2: memref<128x1xf32, #tpu.memory_space<vmem>>, %arg3: memref<256x512xbf16, #tpu.memory_space<vmem>>, %arg4: memref<1x512xf32, #tpu.memory_space<vmem>>, %arg5: memref<128x128xbf16, #tpu.memory_space<vmem>>, %arg6: memref<128x128xf32, #tpu.memory_space<vmem>>, %arg7: memref<128x128xf32, #tpu.memory_space<vmem>>, %arg8: memref<128x128xf32, #tpu.memory_space<vmem>>) attributes {dimension_semantics = [#tpu.dimension_semantics<parallel>], iteration_bounds = array<i64: 2>, scalar_prefetch = 0 : i64, scratch_operands = 0 : i64, tpu.core_type = #tpu.core_type<tc>, window_params = [{transform_indices = @transform_0, window_bounds = array<i64: 128, 256>}, {transform_indices = @transform_1, window_bounds = array<i64: 128, 1>}, {pipeline_mode = #tpu.pipeline_mode<synchronous>, transform_indices = @transform_2, window_bounds = array<i64: 256, 512>}, {pipeline_mode = #tpu.pipeline_mode<synchronous>, transform_indices = @transform_3, window_bounds = array<i64: 1, 512>}, {pipeline_mode = #tpu.pipeline_mode<synchronous>, transform_indices = @transform_4, window_bounds = array<i64: 128, 128>}, {transform_indices = @transform_5, window_bounds = array<i64: 128, 128>}, {transform_indices = @transform_6, window_bounds = array<i64: 128, 128>}, {transform_indices = @transform_7, window_bounds = array<i64: 128, 128>}]} {
    %c0 = arith.constant 0 : index
    %c0_0 = arith.constant 0 : index
    %0 = vector.load %arg1[%c0, %c0_0] : memref<128x256xbf16, #tpu.memory_space<vmem>>, vector<128x256xbf16>
    %c0_1 = arith.constant 0 : index
    %c0_2 = arith.constant 0 : index
    %1 = vector.load %arg3[%c0_1, %c0_2] : memref<256x512xbf16, #tpu.memory_space<vmem>>, vector<256x512xbf16>
    %cst = arith.constant dense<0.000000e+00> : vector<128x512xf32>
    %2 = tpu.matmul %0, %1, %cst {dimension_numbers = #tpu.dot_dimension_numbers<[1], [0], [0], [1], [0, 0, 1, 1], [], []>} : vector<128x256xbf16>, vector<256x512xbf16>, vector<128x512xf32> -> vector<128x512xf32>
    %c0_3 = arith.constant 0 : index
    %c0_4 = arith.constant 0 : index
    %3 = vector.load %arg4[%c0_3, %c0_4] : memref<1x512xf32, #tpu.memory_space<vmem>>, vector<1x512xf32>
    %4 = vector.broadcast %3 : vector<1x512xf32> to vector<128x512xf32>
    %5 = arith.addf %2, %4 : vector<128x512xf32>
    %c0_5 = arith.constant 0 : index
    %c0_6 = arith.constant 0 : index
    %6 = vector.load %arg5[%c0_5, %c0_6] : memref<128x128xbf16, #tpu.memory_space<vmem>>, vector<128x128xbf16>
    %cst_7 = arith.constant 0.000000e+00 : f32
    %7 = vector.broadcast %cst_7 : f32 to vector<128x128xf32>
    %8 = vector.extract_strided_slice %5 {offsets = [0, 0], sizes = [128, 128], strides = [1, 1]} : vector<128x512xf32> to vector<128x128xf32>
    %9 = arith.mulf %8, %8 : vector<128x128xf32>
    %cst_8 = arith.constant dense<0.000000e+00> : vector<128xf32>
    %10 = vector.multi_reduction <add>, %9, %cst_8 [1] : vector<128x128xf32> to vector<128xf32>
    %11 = vector.shape_cast %10 : vector<128xf32> to vector<128x1xf32>
    %cst_9 = arith.constant 1.000000e-24 : f32
    %12 = vector.broadcast %cst_9 : f32 to vector<128x1xf32>
    %13 = arith.maximumf %11, %12 : vector<128x1xf32>
    %14 = math.rsqrt %13 : vector<128x1xf32>
    %cst_10 = arith.constant 5.000000e+01 : f32
    %15 = vector.broadcast %cst_10 : f32 to vector<128x1xf32>
    %16 = arith.mulf %15, %14 : vector<128x1xf32>
    %17 = vector.broadcast %16 : vector<128x1xf32> to vector<128x128xf32>
    %18 = arith.mulf %8, %17 : vector<128x128xf32>
    %19 = arith.truncf %18 : vector<128x128xf32> to vector<128x128xbf16>
    %cst_11 = arith.constant dense<0.000000e+00> : vector<128x128xf32>
    %20 = tpu.matmul %19, %6, %cst_11 {dimension_numbers = #tpu.dot_dimension_numbers<[1], [0], [0], [1], [0, 0, 1, 1], [], []>} : vector<128x128xbf16>, vector<128x128xbf16>, vector<128x128xf32> -> vector<128x128xf32>
    %21 = arith.negf %20 : vector<128x128xf32>
    %22 = math.exp %21 : vector<128x128xf32>
    %cst_12 = arith.constant 1.000000e+00 : f32
    %23 = vector.broadcast %cst_12 : f32 to vector<128x128xf32>
    %24 = arith.addf %23, %22 : vector<128x128xf32>
    %25 = arith.divf %23, %24 : vector<128x128xf32>
    %26 = arith.addf %7, %25 : vector<128x128xf32>
    %27 = vector.extract_strided_slice %5 {offsets = [0, 128], sizes = [128, 128], strides = [1, 1]} : vector<128x512xf32> to vector<128x128xf32>
    %28 = arith.mulf %27, %27 : vector<128x128xf32>
    %cst_13 = arith.constant dense<0.000000e+00> : vector<128xf32>
    %29 = vector.multi_reduction <add>, %28, %cst_13 [1] : vector<128x128xf32> to vector<128xf32>
    %30 = vector.shape_cast %29 : vector<128xf32> to vector<128x1xf32>
    %cst_14 = arith.constant 1.000000e-24 : f32
    %31 = vector.broadcast %cst_14 : f32 to vector<128x1xf32>
    %32 = arith.maximumf %30, %31 : vector<128x1xf32>
    %33 = math.rsqrt %32 : vector<128x1xf32>
    %cst_15 = arith.constant 5.000000e+01 : f32
    %34 = vector.broadcast %cst_15 : f32 to vector<128x1xf32>
    %35 = arith.mulf %34, %33 : vector<128x1xf32>
    %36 = vector.broadcast %35 : vector<128x1xf32> to vector<128x128xf32>
    %37 = arith.mulf %27, %36 : vector<128x128xf32>
    %38 = arith.truncf %37 : vector<128x128xf32> to vector<128x128xbf16>
    %cst_16 = arith.constant dense<0.000000e+00> : vector<128x128xf32>
    %39 = tpu.matmul %38, %6, %cst_16 {dimension_numbers = #tpu.dot_dimension_numbers<[1], [0], [0], [1], [0, 0, 1, 1], [], []>} : vector<128x128xbf16>, vector<128x128xbf16>, vector<128x128xf32> -> vector<128x128xf32>
    %40 = arith.negf %39 : vector<128x128xf32>
    %41 = math.exp %40 : vector<128x128xf32>
    %cst_17 = arith.constant 1.000000e+00 : f32
    %42 = vector.broadcast %cst_17 : f32 to vector<128x128xf32>
    %43 = arith.addf %42, %41 : vector<128x128xf32>
    %44 = arith.divf %42, %43 : vector<128x128xf32>
    %45 = arith.addf %26, %44 : vector<128x128xf32>
    %46 = vector.extract_strided_slice %5 {offsets = [0, 256], sizes = [128, 128], strides = [1, 1]} : vector<128x512xf32> to vector<128x128xf32>
    %47 = arith.mulf %46, %46 : vector<128x128xf32>
    %cst_18 = arith.constant dense<0.000000e+00> : vector<128xf32>
    %48 = vector.multi_reduction <add>, %47, %cst_18 [1] : vector<128x128xf32> to vector<128xf32>
    %49 = vector.shape_cast %48 : vector<128xf32> to vector<128x1xf32>
    %cst_19 = arith.constant 1.000000e-24 : f32
    %50 = vector.broadcast %cst_19 : f32 to vector<128x1xf32>
    %51 = arith.maximumf %49, %50 : vector<128x1xf32>
    %52 = math.rsqrt %51 : vector<128x1xf32>
    %cst_20 = arith.constant 5.000000e+01 : f32
    %53 = vector.broadcast %cst_20 : f32 to vector<128x1xf32>
    %54 = arith.mulf %53, %52 : vector<128x1xf32>
    %55 = vector.broadcast %54 : vector<128x1xf32> to vector<128x128xf32>
    %56 = arith.mulf %46, %55 : vector<128x128xf32>
    %57 = arith.truncf %56 : vector<128x128xf32> to vector<128x128xbf16>
    %cst_21 = arith.constant dense<0.000000e+00> : vector<128x128xf32>
    %58 = tpu.matmul %57, %6, %cst_21 {dimension_numbers = #tpu.dot_dimension_numbers<[1], [0], [0], [1], [0, 0, 1, 1], [], []>} : vector<128x128xbf16>, vector<128x128xbf16>, vector<128x128xf32> -> vector<128x128xf32>
    %59 = arith.negf %58 : vector<128x128xf32>
    %60 = math.exp %59 : vector<128x128xf32>
    %cst_22 = arith.constant 1.000000e+00 : f32
    %61 = vector.broadcast %cst_22 : f32 to vector<128x128xf32>
    %62 = arith.addf %61, %60 : vector<128x128xf32>
    %63 = arith.divf %61, %62 : vector<128x128xf32>
    %64 = arith.addf %45, %63 : vector<128x128xf32>
    %cst_23 = arith.constant 0.333333343 : f32
    %65 = vector.broadcast %cst_23 : f32 to vector<128x128xf32>
    %66 = arith.mulf %64, %65 : vector<128x128xf32>
    %c0_24 = arith.constant 0 : index
    %c0_25 = arith.constant 0 : index
    %67 = vector.load %arg2[%c0_24, %c0_25] : memref<128x1xf32, #tpu.memory_space<vmem>>, vector<128x1xf32>
    %68 = vector.broadcast %67 : vector<128x1xf32> to vector<128x128xf32>
    %69 = arith.mulf %66, %68 : vector<128x128xf32>
    %70 = math.sqrt %69 : vector<128x128xf32>
    %71 = tpu.iota {dimensions = array<i32: 1>} : vector<128x128xi32>
    %c127_i32 = arith.constant 127 : i32
    %72 = vector.broadcast %c127_i32 : i32 to vector<128x128xi32>
    %73 = arith.cmpi slt, %71, %72 : vector<128x128xi32>
    %cst_26 = arith.constant -1.000000e+00 : f32
    %74 = vector.broadcast %cst_26 : f32 to vector<128x128xf32>
    %75 = arith.select %73, %70, %74 : vector<128x128xi1>, vector<128x128xf32>
    %cst_27 = arith.constant dense<0xFF800000> : vector<128xf32>
    %76 = vector.multi_reduction <maximumf>, %75, %cst_27 [1] : vector<128x128xf32> to vector<128xf32>
    %77 = vector.shape_cast %76 : vector<128xf32> to vector<128x1xf32>
    %78 = vector.broadcast %77 : vector<128x1xf32> to vector<128x128xf32>
    %79 = arith.cmpf oeq, %70, %78 : vector<128x128xf32>
    %80 = arith.extui %79 : vector<128x128xi1> to vector<128x128xi32>
    %81 = arith.sitofp %80 : vector<128x128xi32> to vector<128x128xf32>
    %82 = arith.mulf %70, %81 : vector<128x128xf32>
    %c0_28 = arith.constant 0 : index
    %c0_29 = arith.constant 0 : index
    %83 = vector.load %arg6[%c0_28, %c0_29] : memref<128x128xf32, #tpu.memory_space<vmem>>, vector<128x128xf32>
    tpu.vector_store %arg6[%c0_28, %c0_29], %82 {strides = array<i32>} : memref<128x128xf32, #tpu.memory_space<vmem>>, vector<128x128xf32>,
    %84 = vector.extract_strided_slice %5 {offsets = [0, 256], sizes = [128, 128], strides = [1, 1]} : vector<128x512xf32> to vector<128x128xf32>
    %c0_30 = arith.constant 0 : index
    %c0_31 = arith.constant 0 : index
    %85 = vector.load %arg8[%c0_30, %c0_31] : memref<128x128xf32, #tpu.memory_space<vmem>>, vector<128x128xf32>
    tpu.vector_store %arg8[%c0_30, %c0_31], %84 {strides = array<i32>} : memref<128x128xf32, #tpu.memory_space<vmem>>, vector<128x128xf32>,
    %86 = vector.extract_strided_slice %5 {offsets = [0, 384], sizes = [128, 128], strides = [1, 1]} : vector<128x512xf32> to vector<128x128xf32>
    %c0_32 = arith.constant 0 : index
    %c0_33 = arith.constant 0 : index
    %87 = vector.load %arg7[%c0_32, %c0_33] : memref<128x128xf32, #tpu.memory_space<vmem>>, vector<128x128xf32>
    tpu.vector_store %arg7[%c0_32, %c0_33], %86 {strides = array<i32>} : memref<128x128xf32, #tpu.memory_space<vmem>>, vector<128x128xf32>,
    return
  }
  func.func @transform_0(%arg0: i32) -> (i32, i32) {
    %c0_i32 = arith.constant 0 : i32
    %c0_i32_0 = arith.constant 0 : i32
    return %arg0, %c0_i32 : i32, i32
  }
  func.func @transform_1(%arg0: i32) -> (i32, i32) {
    %c0_i32 = arith.constant 0 : i32
    %c0_i32_0 = arith.constant 0 : i32
    return %arg0, %c0_i32 : i32, i32
  }
  func.func @transform_2(%arg0: i32) -> (i32, i32) {
    %c0_i32 = arith.constant 0 : i32
    %c0_i32_0 = arith.constant 0 : i32
    %c0_i32_1 = arith.constant 0 : i32
    return %c0_i32, %c0_i32_0 : i32, i32
  }
  func.func @transform_3(%arg0: i32) -> (i32, i32) {
    %c0_i32 = arith.constant 0 : i32
    %c0_i32_0 = arith.constant 0 : i32
    %c0_i32_1 = arith.constant 0 : i32
    return %c0_i32, %c0_i32_0 : i32, i32
  }
  func.func @transform_4(%arg0: i32) -> (i32, i32) {
    %c0_i32 = arith.constant 0 : i32
    %c0_i32_0 = arith.constant 0 : i32
    %c0_i32_1 = arith.constant 0 : i32
    return %c0_i32, %c0_i32_0 : i32, i32
  }
  func.func @transform_5(%arg0: i32) -> (i32, i32) {
    %c0_i32 = arith.constant 0 : i32
    %c0_i32_0 = arith.constant 0 : i32
    return %arg0, %c0_i32 : i32, i32
  }
  func.func @transform_6(%arg0: i32) -> (i32, i32) {
    %c0_i32 = arith.constant 0 : i32
    %c0_i32_0 = arith.constant 0 : i32
    return %arg0, %c0_i32 : i32, i32
  }
  func.func @transform_7(%arg0: i32) -> (i32, i32) {
    %c0_i32 = arith.constant 0 : i32
    %c0_i32_0 = arith.constant 0 : i32
    return %arg0, %c0_i32 : i32, i32
  }
}

</mosaic_0001>

<bundles_post_ra>
// kernel: detic_head.1
= control target key start
LH: loop header
LB: loop body
LE: loop exit
PB: predicated region body
PF: predicated region fallthrough
CT: control target
= control target key end

     0   :  { %13 = vsyncpa [#allocation3], 0  ;;  %s4980_s0 = inlined_call_operand.vmem [shape: bf16[256,256], index: 0, kind: input, shape index: {}]   ;;  %s4981_s1 = inlined_call_operand.vmem [shape: f32[256,1], index: 1, kind: input, shape index: {}]   ;;  %s4982_s2 = inlined_call_operand.vmem [shape: bf16[256,512], index: 2, kind: input, shape index: {}]   ;;  %s4983_s3 = inlined_call_operand.vmem [shape: f32[1,512], index: 3, kind: input, shape index: {}]   ;;  %s4984_s4 = inlined_call_operand.vmem [shape: bf16[128,128], index: 4, kind: input, shape index: {}]   ;;  %s4985_s5 = inlined_call_operand.hbm [shape: f32[256,128], index: 5, kind: output, shape index: {0}]   ;;  %s4986_s6 = inlined_call_operand.vmem [shape: f32[256,128], index: 6, kind: output, shape index: {1}]   ;;  %s4987_s7 = inlined_call_operand.hbm [shape: f32[256,128], index: 7, kind: output, shape index: {2}]  }
   0x1   :  { %15 = vsyncpa [#allocation3 + $0x1], 0 }
   0x2   :  { %16 = vsyncpa [#allocation5], 0 }
   0x3   :  { %18 = vsyncpa [#allocation5 + $0x1], 0  ;;  %s3668_s24 = smov 0   ;;  %s3670_s25 = smov 0  }
   0x4   :  { %s3672_s26 = smov 0   ;;  %s3674_s27 = smov 0  }
   0x5 LB: > { %s3689_s28 = sadd.s32 4294967295, %s3620_s27   ;;  %s2688_s29 = sadd.s32 4294967294, %s3620_s27   ;;  %s3620_s27 = sphi %s3674_s27, %s5020_s27   ;;  %s3616_s26 = sphi %s3672_s26, %s5019_s26   ;;  %s3612_s25 = sphi %s3670_s25, %s5018_s25   ;;  %s3608_s24 = sphi %s3668_s24, %s5017_s24  }
   0x6   : > { %s3693_s30 = sadd.s32 1, %s3620_s27   ;;  %s146_s8 = sadd.s32 1, %s3616_s26 }
   0x7   : > { %s143_s9 = ssub.s32 %s3620_s27, %s3693_s30  ;;  %p156_p0 = scmp.ne.s32.totalorder %s3616_s26, %s3612_s25 }
   0x8   : > { %p144_p1 = scmp.eq.s32.totalorder %s143_s9, 0  ;;  %p157_p2 = scmp.eq.s32.totalorder %s3689_s28, 1 }
   0x9   : > { %p162_p3 = scmp.ne.s32.totalorder %s3612_s25, %s3608_s24  ;;  %p163_p4 = scmp.eq.s32.totalorder %s2688_s29, 1 }
   0xa   : > { %s3704_s10 = scalar_select %p144_p1, %s3616_s26, %s146_s8  }
   0xb   : > { %p3706_p5 = por %p157_p2, %p156_p0  ;;  %p3710_p6 = por %p163_p4, %p162_p3 }
   0xc   : > { %p2691_p7 = scmp.ge.s32.totalorder %s3620_s27, 1  ;;  %p261_p8 = scmp.lt.s32.totalorder %s3620_s27, 3 }
   0xe   : > { %p262_p9 = pnand %p2691_p7, %p261_p8 }
  0x10   : > { %265 = sbr.rel (%p262_p9) target bundleno = 1014 (0x3f6), region = 40 }
  0x17   : > { %v3074_v0 = vld [vmem:[%s4982_s2 + $0x4] ss:$16 sps:$4 sm:$0xff]   ;;  %v3076_v1 = vld [vmem:[%s4982_s2 + $0xc] ss:$16 sps:$4 sm:$0xff]   ;;  %v3078_v2 = vld [vmem:[%s4982_s2] ss:$16 sps:$4 sm:$0xff]  }
  0x18   : > { %833 = vmatprep.subr.bf16.mxu0 %v3074_v0  ;;  %v3079_v3 = vld [vmem:[%s4982_s2 + $0x8] ss:$16 sps:$4 sm:$0xff]   ;;  %946 = vmatprep.subr.bf16.mxu1 %v3076_v1  ;;  %v3080_v4 = vld [vmem:[%s4982_s2 + $0x24] ss:$16 sps:$4 sm:$0xff]   ;;  %v3082_v5 = vld [vmem:[%s4982_s2 + $0x2c] ss:$16 sps:$4 sm:$0xff]  }
  0x19   : > { %834 = vmatpush1.bf16.msra.mxu0 %v3078_v2  ;;  %947 = vmatpush1.bf16.msra.mxu1 %v3079_v3  ;;  %v3084_v6 = vld [vmem:[%s4982_s2 + $0x20] ss:$16 sps:$4 sm:$0xff]   ;;  %v3085_v7 = vld [vmem:[%s4982_s2 + $0x28] ss:$16 sps:$4 sm:$0xff]   ;;  %v3086_v8 = vld [vmem:[%s4982_s2 + $0x44] ss:$16 sps:$4 sm:$0xff]  }
  0x1a   : > { %835 = vmatprep.subr.bf16.mxu0 %v3080_v4  ;;  %948 = vmatprep.subr.bf16.mxu1 %v3082_v5  ;;  %v3088_v9 = vld [vmem:[%s4982_s2 + $0x4c] ss:$16 sps:$4 sm:$0xff]   ;;  %v3090_v10 = vld [vmem:[%s4982_s2 + $0x40] ss:$16 sps:$4 sm:$0xff]   ;;  %v3091_v11 = vld [vmem:[%s4982_s2 + $0x48] ss:$16 sps:$4 sm:$0xff]  }
  0x1b   : > { %v3092_v12 = vld [vmem:[%s4982_s2 + $0x64] ss:$16 sps:$4 sm:$0xff]   ;;  %v3094_v13 = vld [vmem:[%s4982_s2 + $0x6c] ss:$16 sps:$4 sm:$0xff]   ;;  %v3096_v14 = vld [vmem:[%s4982_s2 + $0x60] ss:$16 sps:$4 sm:$0xff]  }
  0x1c   : > { %v3097_v15 = vld [vmem:[%s4982_s2 + $0x68] ss:$16 sps:$4 sm:$0xff]   ;;  %v3098_v16 = vld [vmem:[%s4982_s2 + $0x84] ss:$16 sps:$4 sm:$0xff]   ;;  %v3100_v17 = vld [vmem:[%s4982_s2 + $0x8c] ss:$16 sps:$4 sm:$0xff]  }
  0x1d   : > { %836 = vmatpush1.bf16.msra.mxu0 %v3084_v6  ;;  %949 = vmatpush1.bf16.msra.mxu1 %v3085_v7  ;;  %v3102_v18 = vld [vmem:[%s4982_s2 + $0x80] ss:$16 sps:$4 sm:$0xff]   ;;  %v3103_v19 = vld [vmem:[%s4982_s2 + $0x88] ss:$16 sps:$4 sm:$0xff]   ;;  %v3104_v20 = vld [vmem:[%s4982_s2 + $0xa4] ss:$16 sps:$4 sm:$0xff]  }
  0x1e   : > { %837 = vmatprep.subr.bf16.mxu0 %v3086_v8  ;;  %950 = vmatprep.subr.bf16.mxu1 %v3088_v9  ;;  %v3106_v21 = vld [vmem:[%s4982_s2 + $0xac] ss:$16 sps:$4 sm:$0xff]   ;;  %v3108_v22 = vld [vmem:[%s4982_s2 + $0xa0] ss:$16 sps:$4 sm:$0xff]   ;;  %v3109_v23 = vld [vmem:[%s4982_s2 + $0xa8] ss:$16 sps:$4 sm:$0xff]  }
  0x1f   : > { %v3110_v24 = vld [vmem:[%s4982_s2 + $0xc4] ss:$16 sps:$4 sm:$0xff]   ;;  %v3112_v25 = vld [vmem:[%s4982_s2 + $0xcc] ss:$16 sps:$4 sm:$0xff]   ;;  %v3114_v26 = vld [vmem:[%s4982_s2 + $0xc0] ss:$16 sps:$4 sm:$0xff]  }
  0x20   : > { %v3115_v27 = vld [vmem:[%s4982_s2 + $0xc8] ss:$16 sps:$4 sm:$0xff]   ;;  %v3116_v28 = vld [vmem:[%s4982_s2 + $0xe4] ss:$16 sps:$4 sm:$0xff]   ;;  %v3118_v29 = vld [vmem:[%s4982_s2 + $0xec] ss:$16 sps:$4 sm:$0xff]  }
  0x21   : > { %838 = vmatpush1.bf16.msra.mxu0 %v3090_v10  ;;  %951 = vmatpush1.bf16.msra.mxu1 %v3091_v11  ;;  %s2694_s17 = sshll.u32 %s3689_s28, 4  ;;  %v3120_v30 = vld [vmem:[%s4982_s2 + $0xe0] ss:$16 sps:$4 sm:$0xff]   ;;  %v3121_v31 = vld [vmem:[%s4982_s2 + $0xe8] ss:$16 sps:$4 sm:$0xff]   ;;  %s3938_s16 = sand.u32 1, %s3612_s25  }
  0x22   : > { %839 = vmatprep.subr.bf16.mxu0 %v3092_v12  ;;  %952 = vmatprep.subr.bf16.mxu1 %v3094_v13  ;;  %v3122_v32 = vld [vmem:[%s4982_s2 + $0x104] ss:$16 sps:$4 sm:$0xff]   ;;  %v3124_v33 = vld [vmem:[%s4982_s2 + $0x10c] ss:$16 sps:$4 sm:$0xff]   ;;  %p310_p10 = scmp.lt.s32.totalorder %s2694_s17, 31  ;;  %s2524_s9 = scalar_lea.sflag [#allocation5], %s3938_s16 }
  0x23   : > { %v3126_v34 = vld [vmem:[%s4982_s2 + $0x100] ss:$16 sps:$4 sm:$0xff]   ;;  %v3127_v35 = vld [vmem:[%s4982_s2 + $0x108] ss:$16 sps:$4 sm:$0xff]   ;;  %v3128_v36 = vld [vmem:[%s4982_s2 + $0x124] ss:$16 sps:$4 sm:$0xff]  }
  0x24   : > { %v3130_v37 = vld [vmem:[%s4982_s2 + $0x12c] ss:$16 sps:$4 sm:$0xff]   ;;  %s5022_s17 = smov (!%p310_p10, %s2694_s17), 31  ;;  %v3132_v38 = vld [vmem:[%s4982_s2 + $0x120] ss:$16 sps:$4 sm:$0xff]   ;;  %s3623_s14 = smov [#allocation4]  }
  0x25   : > { %840 = vmatpush1.bf16.msra.mxu0 %v3096_v14  ;;  %953 = vmatpush1.bf16.msra.mxu1 %v3097_v15  ;;  %v3133_v39 = vld [vmem:[%s4982_s2 + $0x128] ss:$16 sps:$4 sm:$0xff]   ;;  %v3134_v40 = vld [vmem:[%s4982_s2 + $0x144] ss:$16 sps:$4 sm:$0xff]   ;;  %v3136_v41 = vld [vmem:[%s4982_s2 + $0x14c] ss:$16 sps:$4 sm:$0xff]  }
  0x26   : > { %841 = vmatprep.subr.bf16.mxu0 %v3098_v16  ;;  %954 = vmatprep.subr.bf16.mxu1 %v3100_v17  ;;  %s3843_s15 = sshll.u32 %s5022_s17, 3  ;;  %v3138_v42 = vld [vmem:[%s4982_s2 + $0x140] ss:$16 sps:$4 sm:$0xff]   ;;  %v3139_v43 = vld [vmem:[%s4982_s2 + $0x148] ss:$16 sps:$4 sm:$0xff]   ;;  %v4988_v16 = vlaneseq }
  0x27   : > { %v3140_v44 = vld [vmem:[%s4982_s2 + $0x164] ss:$16 sps:$4 sm:$0xff]   ;;  %s3858_s17 = scalar_lea.vmem %s4980_s0, %s3843_s15  ;;  %v3142_v45 = vld [vmem:[%s4982_s2 + $0x16c] ss:$16 sps:$4 sm:$0xff]   ;;  %v3144_v46 = vld [vmem:[%s4982_s2 + $0x160] ss:$16 sps:$4 sm:$0xff]   ;;  %s3959_s20 = scalar_lea.vmem %s4986_s6, %s3843_s15 }
  0x28   : > { %v3145_v47 = vld [vmem:[%s4982_s2 + $0x168] ss:$16 sps:$4 sm:$0xff]   ;;  %v3172_v48 = vld [vmem:[%s3858_s17 + $0x4] ss:$8 sps:$4 sm:$0xff]   ;;  %v3150_v51 = vld [vmem:[%s4982_s2 + $0x180] ss:$16 sps:$4 sm:$0xff]   ;;  %s4350_s19 = scalar_lea.vmem %s4981_s1, %s3843_s15 }
  0x29   : > { %842 = vmatpush1.bf16.msra.mxu0 %v3102_v18  ;;  %955 = vmatpush1.bf16.msra.mxu1 %v3103_v19  ;;  %v3146_v49 = vld [vmem:[%s4982_s2 + $0x184] ss:$16 sps:$4 sm:$0xff]   ;;  %v3148_v50 = vld [vmem:[%s4982_s2 + $0x18c] ss:$16 sps:$4 sm:$0xff]   ;;  %v3151_v52 = vld [vmem:[%s4982_s2 + $0x188] ss:$16 sps:$4 sm:$0xff]  }
  0x2a   : > { %843 = vmatprep.subr.bf16.mxu0 %v3104_v20  ;;  %956 = vmatprep.subr.bf16.mxu1 %v3106_v21  ;;  %v3152_v53 = vld [vmem:[%s4982_s2 + $0x1a4] ss:$16 sps:$4 sm:$0xff]   ;;  %v3154_v54 = vld [vmem:[%s4982_s2 + $0x1ac] ss:$16 sps:$4 sm:$0xff]   ;;  %v3156_v55 = vld [vmem:[%s4982_s2 + $0x1a0] ss:$16 sps:$4 sm:$0xff]  }
  0x2b   : > { %865 = vmatprep.mubr.bf16.mxu0 %v3172_v48  ;;  %978 = vmatprep.mubr.bf16.mxu1 %v3172_v48  ;;  %v3157_v56 = vld [vmem:[%s4982_s2 + $0x1a8] ss:$16 sps:$4 sm:$0xff]   ;;  %v3158_v57 = vld [vmem:[%s4982_s2 + $0x1c4] ss:$16 sps:$4 sm:$0xff]   ;;  %v3160_v58 = vld [vmem:[%s4982_s2 + $0x1cc] ss:$16 sps:$4 sm:$0xff]  }
  0x2c   : > { %v3162_v59 = vld [vmem:[%s4982_s2 + $0x1c0] ss:$16 sps:$4 sm:$0xff]   ;;  %v3163_v60 = vld [vmem:[%s4982_s2 + $0x1c8] ss:$16 sps:$4 sm:$0xff]   ;;  %v3164_v61 = vld [vmem:[%s4982_s2 + $0x1e4] ss:$16 sps:$4 sm:$0xff]  }
  0x2d   : > { %844 = vmatpush1.bf16.msra.mxu0 %v3108_v22  ;;  %957 = vmatpush1.bf16.msra.mxu1 %v3109_v23  ;;  %v3166_v62 = vld [vmem:[%s4982_s2 + $0x1ec] ss:$16 sps:$4 sm:$0xff]   ;;  %v3168_v63 = vld [vmem:[%s4982_s2 + $0x1e0] ss:$16 sps:$4 sm:$0xff]   ;;  %v3169_v0 = vld [vmem:[%s4982_s2 + $0x1e8] ss:$16 sps:$4 sm:$0xff]  }
  0x2e   : > { %845 = vmatprep.subr.bf16.mxu0 %v3110_v24  ;;  %958 = vmatprep.subr.bf16.mxu1 %v3112_v25  ;;  %v3170_v1 = vld [vmem:[%s3858_s17] ss:$8 sps:$4 sm:$0xff]   ;;  %v3173_v2 = vld [vmem:[%s3858_s17 + $0x14] ss:$8 sps:$4 sm:$0xff]   ;;  %v3175_v3 = vld [vmem:[%s3858_s17 + $0x10] ss:$8 sps:$4 sm:$0xff]  }
  0x2f   : > { %v3176_v4 = vld [vmem:[%s3858_s17 + $0x24] ss:$8 sps:$4 sm:$0xff]   ;;  %v3178_v5 = vld [vmem:[%s3858_s17 + $0x20] ss:$8 sps:$4 sm:$0xff]   ;;  %v3179_v6 = vld [vmem:[%s3858_s17 + $0x34] ss:$8 sps:$4 sm:$0xff]  }
  0x30   : > { %v3181_v7 = vld [vmem:[%s3858_s17 + $0x30] ss:$8 sps:$4 sm:$0xff]   ;;  %v3182_v8 = vld [vmem:[%s3858_s17 + $0x44] ss:$8 sps:$4 sm:$0xff]   ;;  %v3184_v9 = vld [vmem:[%s3858_s17 + $0x40] ss:$8 sps:$4 sm:$0xff]  }
  0x31   : > { %846 = vmatpush1.bf16.msra.mxu0 %v3114_v26  ;;  %959 = vmatpush1.bf16.msra.mxu1 %v3115_v27  ;;  %v3185_v10 = vld [vmem:[%s3858_s17 + $0x54] ss:$8 sps:$4 sm:$0xff]   ;;  %v3187_v11 = vld [vmem:[%s3858_s17 + $0x50] ss:$8 sps:$4 sm:$0xff]   ;;  %v3188_v12 = vld [vmem:[%s3858_s17 + $0x64] ss:$8 sps:$4 sm:$0xff]  }
  0x32   : > { %847 = vmatprep.subr.bf16.mxu0 %v3116_v28  ;;  %960 = vmatprep.subr.bf16.mxu1 %v3118_v29  ;;  %v3190_v13 = vld [vmem:[%s3858_s17 + $0x60] ss:$8 sps:$4 sm:$0xff]   ;;  %v3191_v14 = vld [vmem:[%s3858_s17 + $0x74] ss:$8 sps:$4 sm:$0xff]   ;;  %v3193_v15 = vld [vmem:[%s3858_s17 + $0x70] ss:$8 sps:$4 sm:$0xff]  }
  0x33   : > { %v414_v17 = vshrl.u32 %v4988_v16, 7  ;;  %v411_v20 = vld [vmem:[%s4983_s3] sm:$0xf]  ;;  %s2692_s17 = sshll.u32 %s3938_s16, 7  ;;  %s2862_s15 = sshll.u32 %s3689_s28, 11 }
  0x34   : > { %s3967_s21 = scalar_lea.vmem [#allocation4], %s2692_s17  ;;  %s4826_s29 = scalar_lea.hbm %s4987_s7, %s2862_s15 }
  0x35   : > { %848 = vmatpush1.bf16.msra.mxu0 %v3120_v30  ;;  %961 = vmatpush1.bf16.msra.mxu1 %v3121_v31  ;;  %v415_v18 = vsub.s32 0, %v414_v17  ;;  %v423_v19 = vsub.s32 2, %v414_v17  ;;  %v419_v21 = vsub.s32 1, %v414_v17  ;;  %v427_v22 = vsub.s32 3, %v414_v17  ;;  %s2557_s8 = sshll.u32 %s3967_s21, 4  ;;  %s4829_s8 = int_to_ptr.vmem [resolvable:$true] %s2557_s8 }
  0x36   : > { %849 = vmatprep.subr.bf16.mxu0 %v3122_v32  ;;  %962 = vmatprep.subr.bf16.mxu1 %v3124_v33  ;;  %s3526_s13 = scalar_lea.vmem %s4829_s8, 2048 }
  0x37   : > { %v3940_v23 = vrot.slane %v411_v20, %v415_v18  ;;  %v3943_v24 = vrot.slane %v411_v20, %v423_v19  ;;  %v3945_v25 = vrot.slane %v411_v20, %v419_v21  ;;  %v3947_v26 = vrot.slane %v411_v20, %v427_v22  ;;  %v4058_v20 = vld [vmem:[%s4984_s4 + $0x8] sm:$0xff]   ;;  %p3527_p11 = scmp.ne.s32.totalorder %s4829_s8, %s3526_s13 }
  0x39   : > { %850 = vmatpush1.bf16.msra.mxu0 %v3126_v34  ;;  %963 = vmatpush1.bf16.msra.mxu1 %v3127_v35  ;;  %p3528_p12 = pnand %p3527_p11, %p3706_p5 }
  0x3a   : > { %851 = vmatprep.subr.bf16.mxu0 %v3128_v36  ;;  %964 = vmatprep.subr.bf16.mxu1 %v3130_v37 }
  0x3b   : > { %p3529_p13 = pneg %p3528_p12 }
  0x3d   : > { %852 = vmatpush1.bf16.msra.mxu0 %v3132_v38  ;;  %965 = vmatpush1.bf16.msra.mxu1 %v3133_v39 }
  0x3e   : > { %853 = vmatprep.subr.bf16.mxu0 %v3134_v40  ;;  %966 = vmatprep.subr.bf16.mxu1 %v3136_v41 }
  0x41   : > { %854 = vmatpush1.bf16.msra.mxu0 %v3138_v42  ;;  %967 = vmatpush1.bf16.msra.mxu1 %v3139_v43 }
  0x42   : > { %855 = vmatprep.subr.bf16.mxu0 %v3140_v44  ;;  %968 = vmatprep.subr.bf16.mxu1 %v3142_v45 }
  0x45   : > { %856 = vmatpush1.bf16.msra.mxu0 %v3144_v46  ;;  %969 = vmatpush1.bf16.msra.mxu1 %v3145_v47 }
  0x46   : > { %857 = vmatprep.subr.bf16.mxu0 %v3146_v49  ;;  %970 = vmatprep.subr.bf16.mxu1 %v3148_v50 }
  0x49   : > { %858 = vmatpush1.bf16.msra.mxu0 %v3150_v51  ;;  %971 = vmatpush1.bf16.msra.mxu1 %v3151_v52 }
  0x4a   : > { %859 = vmatprep.subr.bf16.mxu0 %v3152_v53  ;;  %972 = vmatprep.subr.bf16.mxu1 %v3154_v54 }
  0x4d   : > { %860 = vmatpush1.bf16.msra.mxu0 %v3156_v55  ;;  %973 = vmatpush1.bf16.msra.mxu1 %v3157_v56 }
  0x4e   : > { %861 = vmatprep.subr.bf16.mxu0 %v3158_v57  ;;  %974 = vmatprep.subr.bf16.mxu1 %v3160_v58 }
  0x51   : > { %862 = vmatpush1.bf16.msra.mxu0 %v3162_v59  ;;  %975 = vmatpush1.bf16.msra.mxu1 %v3163_v60 }
  0x52   : > { %863 = vmatprep.subr.bf16.mxu0 %v3164_v61  ;;  %976 = vmatprep.subr.bf16.mxu1 %v3166_v62 }
  0x55   : > { %864 = vmatpush1.bf16.msra.mxu0 %v3168_v63  ;;  %977 = vmatpush1.bf16.msra.mxu1 %v3169_v0 }
  0x58   : > { %866 = vmatmul.mubr.bf16.vlgmr.msra.gmra.mrb[0].mxu0 %v3170_v1  ;;  %979 = vmatmul.mubr.bf16.vlgmr.msra.gmra.mrb[0].mxu1 %v3170_v1 }
  0x59   : > { %875 = vmatprep.mubr.bf16.mxu0 %v3173_v2  ;;  %988 = vmatprep.mubr.bf16.mxu1 %v3173_v2 }
  0x60   : > { %876 = vmatmul.mubr.bf16.gmra.mrb[4].mxu0 %v3175_v3  ;;  %989 = vmatmul.mubr.bf16.gmra.mrb[4].mxu1 %v3175_v3 }
  0x61   : > { %885 = vmatprep.mubr.bf16.mxu0 %v3176_v4  ;;  %998 = vmatprep.mubr.bf16.mxu1 %v3176_v4 }
  0x68   : > { %886 = vmatmul.mubr.bf16.gmra.mrb[8].mxu0 %v3178_v5  ;;  %999 = vmatmul.mubr.bf16.gmra.mrb[8].mxu1 %v3178_v5 }
  0x69   : > { %895 = vmatprep.mubr.bf16.mxu0 %v3179_v6  ;;  %1008 = vmatprep.mubr.bf16.mxu1 %v3179_v6 }
  0x70   : > { %896 = vmatmul.mubr.bf16.gmra.mrb[12].mxu0 %v3181_v7  ;;  %1009 = vmatmul.mubr.bf16.gmra.mrb[12].mxu1 %v3181_v7  ;;  %v4029_v7 = vld [vmem:[%s4984_s4] sm:$0xff]  }
  0x71   : > { %905 = vmatprep.mubr.bf16.mxu0 %v3182_v8  ;;  %1018 = vmatprep.mubr.bf16.mxu1 %v3182_v8 }
  0x72   : > { %2912 = vmatprep.subr.bf16.mxu0 %v4029_v7  ;;  %2944 = vmatprep.subr.bf16.mxu1 %v4029_v7 }
  0x73   : > { %2913 = vmatpush3.bf16.msra.mxu0 %v4029_v7  ;;  %2945 = vmatpush3.bf16.msra.mxu1 %v4029_v7 }
  0x74   : > { %2914 = vmatprep.subr.bf16.mxu0 %v4058_v20  ;;  %2946 = vmatprep.subr.bf16.mxu1 %v4058_v20 }
  0x77   : > { %2915 = vmatpush3.bf16.msra.mxu0 %v4058_v20  ;;  %2947 = vmatpush3.bf16.msra.mxu1 %v4058_v20 }
  0x78   : > { %906 = vmatmul.mubr.bf16.gmra.mrb[16].mxu0 %v3184_v9  ;;  %1019 = vmatmul.mubr.bf16.gmra.mrb[16].mxu1 %v3184_v9 }
  0x79   : > { %915 = vmatprep.mubr.bf16.mxu0 %v3185_v10  ;;  %1028 = vmatprep.mubr.bf16.mxu1 %v3185_v10 }
  0x80   : > { %916 = vmatmul.mubr.bf16.gmra.mrb[20].mxu0 %v3187_v11  ;;  %1029 = vmatmul.mubr.bf16.gmra.mrb[20].mxu1 %v3187_v11 }
  0x81   : > { %925 = vmatprep.mubr.bf16.mxu0 %v3188_v12  ;;  %1038 = vmatprep.mubr.bf16.mxu1 %v3188_v12 }
  0x88   : > { %926 = vmatmul.mubr.bf16.gmra.mrb[24].mxu0 %v3190_v13  ;;  %1039 = vmatmul.mubr.bf16.gmra.mrb[24].mxu1 %v3190_v13 }
  0x89   : > { %935 = vmatprep.mubr.bf16.mxu0 %v3191_v14  ;;  %1048 = vmatprep.mubr.bf16.mxu1 %v3191_v14 }
  0x90   : > { %936 = vmatmul.mubr.bf16.gmra.mrb[28].mxu0 %v3193_v15  ;;  %1049 = vmatmul.mubr.bf16.gmra.mrb[28].mxu1 %v3193_v15 }
 0x12b   : > { %v867_v27 = vpop.f32.mrb[0].mxu0  ;;  %v980_v28 = vpop.f32.mrb[0].mxu1 }
 0x12c   : > { %v3950_v29 = vadd.f32 %v867_v27, %v3940_v23  ;;  %v3953_v30 = vadd.f32 %v980_v28, %v3943_v24  ;;  %v869_v31 = vpop.f32.mrb[1].mxu0  ;;  %v982_v32 = vpop.f32.mrb[1].mxu1 }
 0x12d   : > { %v3962_v33 = vadd.f32 %v869_v31, %v3945_v25  ;;  %v983_v34 = vadd.f32 %v982_v32, %v3947_v26  ;;  %v871_v35 = vpop.f32.mrb[2].mxu0  ;;  %v984_v36 = vpop.f32.mrb[2].mxu1 }
 0x12e   : > { %2481 = vst [vmem:[%s3967_s21] sm:$0xff] %v3953_v30  ;;  %v3972_v37 = vadd.f32 %v984_v36, %v3943_v24  ;;  %v873_v38 = vpop.f32.mrb[3].mxu0  ;;  %v986_v39 = vpop.f32.mrb[3].mxu1  ;;  %v1075_v40 = vmul.f32 %v3950_v29, %v3950_v29  ;;  %v1781_v43 = vmul.f32 %v3953_v30, %v3953_v30  ;;  %v3986_v44 = vadd.f32 %v871_v35, %v3940_v23 }
 0x12f   : > { %2497 = vst [vmem:[%s3959_s20] sm:$0xff] %v983_v34  ;;  %v987_v41 = vadd.f32 %v986_v39, %v3947_v26  ;;  %v1452_v42 = vmul.f32 %v3962_v33, %v3962_v33  ;;  %v3989_v45 = vadd.f32 %v873_v38, %v3945_v25  ;;  %v4080_v38 = vld [vmem:[%s4984_s4 + $0x10] sm:$0xff]  }
 0x130   : > { %2482 = vst [vmem:[%s3967_s21 + $0x8] sm:$0xff] %v3972_v37  ;;  %1091 = vadd.xlane.f32.xlu0 %v1075_v40  ;;  %v1782_v47 = vmul.f32 %v3972_v37, %v3972_v37  ;;  %v1076_v57 = vmul.f32 %v3986_v44, %v3986_v44  ;;  %2916 = vmatprep.subr.bf16.mxu0 %v4080_v38 }
 0x131   : > { %2498 = vst [vmem:[%s3959_s20 + $0x8] sm:$0xff] %v987_v41  ;;  %1468 = vadd.xlane.f32.xlu1 %v1452_v42  ;;  %v1453_v61 = vmul.f32 %v3989_v45, %v3989_v45  ;;  %2917 = vmatpush3.bf16.msra.mxu0 %v4080_v38 }
 0x132   : > { %2948 = vmatprep.subr.bf16.mxu1 %v4080_v38 }
 0x133   : > { %v877_v46 = vpop.f32.mrb[4].mxu0  ;;  %v990_v48 = vpop.f32.mrb[4].mxu1  ;;  %2949 = vmatpush3.bf16.msra.mxu1 %v4080_v38 }
 0x134   : > { %v3994_v49 = vadd.f32 %v877_v46, %v3940_v23  ;;  %v879_v50 = vpop.f32.mrb[5].mxu0  ;;  %1797 = vadd.xlane.f32.xlu0 %v1781_v43  ;;  %v3997_v51 = vadd.f32 %v990_v48, %v3943_v24  ;;  %v992_v52 = vpop.f32.mrb[5].mxu1 }
 0x135   : > { %v881_v53 = vpop.f32.mrb[6].mxu0  ;;  %1799 = vadd.xlane.f32.xlu1 %v1782_v47  ;;  %v993_v54 = vadd.f32 %v992_v52, %v3947_v26  ;;  %v994_v55 = vpop.f32.mrb[6].mxu1  ;;  %v4033_v11 = vadd.f32 %v879_v50, %v3945_v25 }
 0x136   : > { %v883_v56 = vpop.f32.mrb[7].mxu0  ;;  %2483 = vst [vmem:[%s3967_s21 + $0x10] sm:$0xff] %v3997_v51  ;;  %v4005_v58 = vadd.f32 %v994_v55, %v3943_v24  ;;  %v996_v59 = vpop.f32.mrb[7].mxu1  ;;  %v4008_v60 = vadd.f32 %v881_v53, %v3940_v23  ;;  %v1077_v63 = vmul.f32 %v3994_v49, %v3994_v49  ;;  %v1783_v4 = vmul.f32 %v3997_v51, %v3997_v51 }
 0x137   : > { %2499 = vst [vmem:[%s3959_s20 + $0x10] sm:$0xff] %v993_v54  ;;  %v997_v62 = vadd.f32 %v996_v59, %v3947_v26  ;;  %v4042_v15 = vadd.f32 %v883_v56, %v3945_v25  ;;  %v1454_v21 = vmul.f32 %v4033_v11, %v4033_v11  ;;  %v4110_v54 = vld [vmem:[%s4984_s4 + $0x18] sm:$0xff]  }
 0x138   : > { %1093 = vadd.xlane.f32.xlu0 %v1076_v57  ;;  %2484 = vst [vmem:[%s3967_s21 + $0x18] sm:$0xff] %v4005_v58  ;;  %v1078_v0 = vmul.f32 %v4008_v60, %v4008_v60  ;;  %v1784_v17 = vmul.f32 %v4005_v58, %v4005_v58  ;;  %2918 = vmatprep.subr.bf16.mxu0 %v4110_v54 }
 0x139   : > { %1470 = vadd.xlane.f32.xlu1 %v1453_v61  ;;  %2500 = vst [vmem:[%s3959_s20 + $0x18] sm:$0xff] %v997_v62  ;;  %v1455_v27 = vmul.f32 %v4042_v15, %v4042_v15  ;;  %2950 = vmatprep.subr.bf16.mxu1 %v4110_v54 }
 0x13a   : > { %2919 = vmatpush3.bf16.msra.mxu0 %v4110_v54  ;;  %2951 = vmatpush3.bf16.msra.mxu1 %v4110_v54 }
 0x13b   : > { %v887_v1 = vpop.f32.mrb[8].mxu0  ;;  %v1000_v2 = vpop.f32.mrb[8].mxu1 }
 0x13c   : > { %1095 = vadd.xlane.f32.xlu0 %v1077_v63  ;;  %v889_v3 = vpop.f32.mrb[9].mxu0  ;;  %v4024_v5 = vadd.f32 %v1000_v2, %v3943_v24  ;;  %v1002_v6 = vpop.f32.mrb[9].mxu1  ;;  %v4051_v19 = vadd.f32 %v887_v1, %v3940_v23  ;;  %v4134_v2 = vld [vmem:[%s4984_s4 + $0x20] sm:$0xff]  }
 0x13d   : > { %1097 = vadd.xlane.f32.xlu1 %v1078_v0  ;;  %v891_v8 = vpop.f32.mrb[10].mxu0  ;;  %v1003_v9 = vadd.f32 %v1002_v6, %v3947_v26  ;;  %v1004_v10 = vpop.f32.mrb[10].mxu1  ;;  %v4085_v42 = vadd.f32 %v889_v3, %v3945_v25  ;;  %2920 = vmatprep.subr.bf16.mxu0 %v4134_v2 }
 0x13e   : > { %v893_v12 = vpop.f32.mrb[11].mxu0  ;;  %2485 = vst [vmem:[%s3967_s21 + $0x20] sm:$0xff] %v4024_v5  ;;  %v4038_v13 = vadd.f32 %v1004_v10, %v3943_v24  ;;  %v1006_v14 = vpop.f32.mrb[11].mxu1  ;;  %v4067_v22 = vadd.f32 %v891_v8, %v3940_v23  ;;  %v1079_v34 = vmul.f32 %v4051_v19, %v4051_v19  ;;  %2921 = vmatpush3.bf16.msra.mxu0 %v4134_v2 }
 0x13f   : > { %2501 = vst [vmem:[%s3959_s20 + $0x20] sm:$0xff] %v1003_v9  ;;  %v1007_v18 = vadd.f32 %v1006_v14, %v3947_v26  ;;  %v4094_v48 = vadd.f32 %v893_v12, %v3945_v25  ;;  %v1456_v55 = vmul.f32 %v4085_v42, %v4085_v42  ;;  %2952 = vmatprep.subr.bf16.mxu1 %v4134_v2 }
 0x140   : > { %1801 = vadd.xlane.f32.xlu0 %v1783_v4  ;;  %2486 = vst [vmem:[%s3967_s21 + $0x28] sm:$0xff] %v4038_v13  ;;  %v1080_v50 = vmul.f32 %v4067_v22, %v4067_v22  ;;  %2953 = vmatpush3.bf16.msra.mxu1 %v4134_v2 }
 0x141   : > { %1803 = vadd.xlane.f32.xlu1 %v1784_v17  ;;  %2502 = vst [vmem:[%s3959_s20 + $0x28] sm:$0xff] %v1007_v18  ;;  %v1457_v57 = vmul.f32 %v4094_v48, %v4094_v48 }
 0x143   : > { %v897_v28 = vpop.f32.mrb[12].mxu0  ;;  %v1010_v31 = vpop.f32.mrb[12].mxu1 }
 0x144   : > { %1472 = vadd.xlane.f32.xlu0 %v1454_v21  ;;  %v899_v32 = vpop.f32.mrb[13].mxu0  ;;  %v4075_v35 = vadd.f32 %v1010_v31, %v3943_v24  ;;  %v1012_v36 = vpop.f32.mrb[13].mxu1  ;;  %v4103_v53 = vadd.f32 %v897_v28, %v3940_v23 }
 0x145   : > { %1474 = vadd.xlane.f32.xlu1 %v1455_v27  ;;  %v901_v39 = vpop.f32.mrb[14].mxu0  ;;  %v1013_v40 = vadd.f32 %v1012_v36, %v3947_v26  ;;  %v1014_v41 = vpop.f32.mrb[14].mxu1  ;;  %v4139_v8 = vadd.f32 %v899_v32, %v3945_v25  ;;  %v4164_v27 = vld [vmem:[%s4984_s4 + $0x28] sm:$0xff]  }
 0x146   : > { %v903_v43 = vpop.f32.mrb[15].mxu0  ;;  %2487 = vst [vmem:[%s3967_s21 + $0x30] sm:$0xff] %v4075_v35  ;;  %v4090_v46 = vadd.f32 %v1014_v41, %v3943_v24  ;;  %v1016_v47 = vpop.f32.mrb[15].mxu1  ;;  %v4119_v56 = vadd.f32 %v901_v39, %v3940_v23  ;;  %v1081_v63 = vmul.f32 %v4103_v53, %v4103_v53  ;;  %2922 = vmatprep.subr.bf16.mxu0 %v4164_v27 }
 0x147   : > { %2503 = vst [vmem:[%s3959_s20 + $0x30] sm:$0xff] %v1013_v40  ;;  %v1017_v52 = vadd.f32 %v1016_v47, %v3947_v26  ;;  %v4148_v14 = vadd.f32 %v903_v43, %v3945_v25  ;;  %v1458_v28 = vmul.f32 %v4139_v8, %v4139_v8  ;;  %2954 = vmatprep.subr.bf16.mxu1 %v4164_v27  ;;  %v4188_v47 = vld [vmem:[%s4984_s4 + $0x30] sm:$0xff]  }
 0x148   : > { %1099 = vadd.xlane.f32.xlu0 %v1079_v34  ;;  %2488 = vst [vmem:[%s3967_s21 + $0x38] sm:$0xff] %v4090_v46  ;;  %v1082_v17 = vmul.f32 %v4119_v56, %v4119_v56  ;;  %2923 = vmatpush3.bf16.msra.mxu0 %v4164_v27 }
 0x149   : > { %1101 = vadd.xlane.f32.xlu1 %v1080_v50  ;;  %2504 = vst [vmem:[%s3959_s20 + $0x38] sm:$0xff] %v1017_v52  ;;  %v1459_v32 = vmul.f32 %v4148_v14, %v4148_v14  ;;  %2955 = vmatpush3.bf16.msra.mxu1 %v4164_v27 }
 0x14a   : > { %2924 = vmatprep.subr.bf16.mxu0 %v4188_v47  ;;  %2956 = vmatprep.subr.bf16.mxu1 %v4188_v47 }
 0x14b   : > { %v907_v59 = vpop.f32.mrb[16].mxu0  ;;  %v1020_v61 = vpop.f32.mrb[16].mxu1 }
 0x14c   : > { %1476 = vadd.xlane.f32.xlu0 %v1456_v55  ;;  %v4124_v62 = vpop.f32.mrb[17].mxu0  ;;  %v4129_v0 = vadd.f32 %v1020_v61, %v3943_v24  ;;  %v1022_v1 = vpop.f32.mrb[17].mxu1  ;;  %v4157_v21 = vadd.f32 %v907_v59, %v3940_v23  ;;  %2925 = vmatpush3.bf16.msra.mxu0 %v4188_v47 }
 0x14d   : > { %1478 = vadd.xlane.f32.xlu1 %v1457_v57  ;;  %v911_v3 = vpop.f32.mrb[18].mxu0  ;;  %v1023_v4 = vadd.f32 %v1022_v1, %v3947_v26  ;;  %v1024_v6 = vpop.f32.mrb[18].mxu1  ;;  %2957 = vmatpush3.bf16.msra.mxu1 %v4188_v47 }
 0x14e   : > { %4999 = vst [vmem:[#allocation8_spill] sm:$0xff] %v4129_v0  ;;  %v913_v9 = vpop.f32.mrb[19].mxu0  ;;  %2489 = vst [vmem:[%s3967_s21 + $0x40] sm:$0xff] %v4129_v0  ;;  %v4144_v10 = vadd.f32 %v1024_v6, %v3943_v24  ;;  %v1026_v12 = vpop.f32.mrb[19].mxu1  ;;  %v4173_v31 = vadd.f32 %v911_v3, %v3940_v23  ;;  %v1083_v39 = vmul.f32 %v4157_v21, %v4157_v21 }
 0x14f   : > { %2505 = vst [vmem:[%s3959_s20 + $0x40] sm:$0xff] %v1023_v4  ;;  %v1027_v18 = vadd.f32 %v1026_v12, %v3947_v26  ;;  %v1789_v3 = vmul.f32 %v4129_v0, %v4129_v0  ;;  %v4213_v4 = vld [vmem:[%s4984_s4 + $0x38] sm:$0xff]   ;;  %v4219_v6 = vadd.f32 %v4124_v62, %v3945_v25  ;;  %v4224_v12 = vadd.f32 %v913_v9, %v3945_v25 }
 0x150   : > { %5000 = vst [vmem:[#allocation9_spill] sm:$0xff] %v4144_v10  ;;  %1103 = vadd.xlane.f32.xlu0 %v1081_v63  ;;  %2490 = vst [vmem:[%s3967_s21 + $0x48] sm:$0xff] %v4144_v10  ;;  %v1084_v63 = vmul.f32 %v4173_v31, %v4173_v31  ;;  %2926 = vmatprep.subr.bf16.mxu0 %v4213_v4 }
 0x151   : > { %1105 = vadd.xlane.f32.xlu1 %v1082_v17  ;;  %2506 = vst [vmem:[%s3959_s20 + $0x48] sm:$0xff] %v1027_v18  ;;  %2958 = vmatprep.subr.bf16.mxu1 %v4213_v4  ;;  %v1790_v17 = vmul.f32 %v4144_v10, %v4144_v10 }
 0x152   : > { %2927 = vmatpush3.bf16.msra.mxu0 %v4213_v4  ;;  %2959 = vmatpush3.bf16.msra.mxu1 %v4213_v4 }
 0x153   : > { %v917_v34 = vpop.f32.mrb[20].mxu0  ;;  %v1030_v36 = vpop.f32.mrb[20].mxu1  ;;  %2976 = vmatprep.subr.bf16.mxu0 %v4029_v7  ;;  %3008 = vmatprep.subr.bf16.mxu1 %v4029_v7 }
 0x154   : > { %1480 = vadd.xlane.f32.xlu0 %v1458_v28  ;;  %v4180_v40 = vpop.f32.mrb[21].mxu0  ;;  %v4183_v41 = vadd.f32 %v1030_v36, %v3943_v24  ;;  %v1032_v43 = vpop.f32.mrb[21].mxu1 }
 0x155   : > { %1482 = vadd.xlane.f32.xlu1 %v1459_v32  ;;  %v921_v50 = vpop.f32.mrb[22].mxu0  ;;  %v1033_v52 = vadd.f32 %v1032_v43, %v3947_v26  ;;  %v1034_v55 = vpop.f32.mrb[22].mxu1  ;;  %v4230_v32 = vadd.f32 %v917_v34, %v3940_v23 }
 0x156   : > { %5001 = vst [vmem:[#allocation10_spill] sm:$0xff] %v4183_v41  ;;  %v4192_v57 = vpop.f32.mrb[23].mxu0  ;;  %2491 = vst [vmem:[%s3967_s21 + $0x50] sm:$0xff] %v4183_v41  ;;  %v4197_v59 = vadd.f32 %v1034_v55, %v3943_v24  ;;  %v1036_v61 = vpop.f32.mrb[23].mxu1 }
 0x157   : > { %2507 = vst [vmem:[%s3959_s20 + $0x50] sm:$0xff] %v1033_v52  ;;  %v1037_v1 = vadd.f32 %v1036_v61, %v3947_v26  ;;  %v1460_v61 = vmul.f32 %v4219_v6, %v4219_v6 }
 0x158   : > { %1107 = vadd.xlane.f32.xlu0 %v1083_v39  ;;  %2492 = vst [vmem:[%s3967_s21 + $0x58] sm:$0xff] %v4197_v59 }
 0x159   : > { %1109 = vadd.xlane.f32.xlu1 %v1084_v63  ;;  %2508 = vst [vmem:[%s3959_s20 + $0x58] sm:$0xff] %v1037_v1 }
 0x15b   : > { %v927_v18 = vpop.f32.mrb[24].mxu0  ;;  %v1040_v28 = vpop.f32.mrb[24].mxu1 }
 0x15c   : > { %1813 = vadd.xlane.f32.xlu0 %v1789_v3  ;;  %v4233_v62 = vadd.f32 %v927_v18, %v3940_v23  ;;  %v929_v36 = vpop.f32.mrb[25].mxu0  ;;  %v4236_v39 = vadd.f32 %v1040_v28, %v3943_v24  ;;  %v1042_v9 = vpop.f32.mrb[25].mxu1  ;;  %v4256_v18 = vadd.f32 %v921_v50, %v3940_v23  ;;  %v1461_v28 = vmul.f32 %v4224_v12, %v4224_v12 }
 0x15d   : > { %1815 = vadd.xlane.f32.xlu1 %v1790_v17  ;;  %v4240_v43 = vadd.f32 %v929_v36, %v3945_v25  ;;  %v931_v52 = vpop.f32.mrb[26].mxu0  ;;  %v1043_v34 = vadd.f32 %v1042_v9, %v3947_v26  ;;  %v1044_v55 = vpop.f32.mrb[26].mxu1 }
 0x15e   : > { %5002 = vst [vmem:[#allocation11_spill] sm:$0xff] %v4236_v39  ;;  %v4247_v63 = vadd.f32 %v931_v52, %v3940_v23  ;;  %v933_v1 = vpop.f32.mrb[27].mxu0  ;;  %2493 = vst [vmem:[%s3967_s21 + $0x60] sm:$0xff] %v4236_v39  ;;  %v4252_v3 = vadd.f32 %v1044_v55, %v3943_v24  ;;  %v1046_v17 = vpop.f32.mrb[27].mxu1  ;;  %v1085_v52 = vmul.f32 %v4230_v32, %v4230_v32 }
 0x15f   : > { %5004 = vst [vmem:[#allocation13_spill] sm:$0xff] %v4256_v18  ;;  %v4261_v36 = vadd.f32 %v933_v1, %v3945_v25  ;;  %2509 = vst [vmem:[%s3959_s20 + $0x60] sm:$0xff] %v1043_v34  ;;  %v1047_v9 = vadd.f32 %v1046_v17, %v3947_v26  ;;  %v1086_v50 = vmul.f32 %v4256_v18, %v4256_v18 }
 0x160   : > { %5003 = vst [vmem:[#allocation12_spill] sm:$0xff] %v4252_v3  ;;  %1484 = vadd.xlane.f32.xlu0 %v1460_v61  ;;  %2494 = vst [vmem:[%s3967_s21 + $0x68] sm:$0xff] %v4252_v3  ;;  %v1791_v34 = vmul.f32 %v4183_v41, %v4183_v41  ;;  %v4298_v18 = vadd.f32 %v4192_v57, %v3945_v25 }
 0x161   : > { %1486 = vadd.xlane.f32.xlu1 %v1461_v28  ;;  %2510 = vst [vmem:[%s3959_s20 + $0x68] sm:$0xff] %v1047_v9  ;;  %v1465_v57 = vmul.f32 %v4261_v36, %v4261_v36 }
 0x163   : > { %v937_v55 = vpop.f32.mrb[28].mxu0  ;;  %v1050_v16 = vpop.f32.mrb[28].mxu1 }
 0x164   : > { %1111 = vadd.xlane.f32.xlu0 %v1085_v52  ;;  %v4275_v1 = vadd.f32 %v937_v55, %v3940_v23  ;;  %v939_v61 = vpop.f32.mrb[29].mxu0  ;;  %v4278_v17 = vadd.f32 %v1050_v16, %v3943_v24  ;;  %v1052_v28 = vpop.f32.mrb[29].mxu1  ;;  %v4286_v55 = vadd.f32 %v4180_v40, %v3945_v25 }
 0x165   : > { %1113 = vadd.xlane.f32.xlu1 %v1086_v50  ;;  %v4281_v9 = vadd.f32 %v939_v61, %v3945_v25  ;;  %v941_v10 = vpop.f32.mrb[30].mxu0  ;;  %v1053_v52 = vadd.f32 %v1052_v28, %v3947_v26  ;;  %v1054_v0 = vpop.f32.mrb[30].mxu1  ;;  %v1792_v28 = vmul.f32 %v4197_v59, %v4197_v59 }
 0x166   : > { %5005 = vst [vmem:[#allocation14_spill] sm:$0xff] %v4278_v17  ;;  %v4289_v41 = vadd.f32 %v941_v10, %v3940_v23  ;;  %v943_v16 = vpop.f32.mrb[31].mxu0  ;;  %2495 = vst [vmem:[%s3967_s21 + $0x70] sm:$0xff] %v4278_v17  ;;  %v4294_v50 = vadd.f32 %v1054_v0, %v3943_v24  ;;  %v1056_v61 = vpop.f32.mrb[31].mxu1  ;;  %v1462_v24 = vmul.f32 %v4286_v55, %v4286_v55 }
 0x167   : > { %v4303_v40 = vadd.f32 %v943_v16, %v3945_v25  ;;  %2511 = vst [vmem:[%s3959_s20 + $0x70] sm:$0xff] %v1053_v52  ;;  %v1057_v23 = vadd.f32 %v1056_v61, %v3947_v26  ;;  %v1463_v0 = vmul.f32 %v4298_v18, %v4298_v18  ;;  %v1087_v10 = vmul.f32 %v4233_v62, %v4233_v62 }
 0x168   : > { %5006 = vst [vmem:[#allocation15_spill] sm:$0xff] %v4294_v50  ;;  %1817 = vadd.xlane.f32.xlu0 %v1791_v34  ;;  %2496 = vst [vmem:[%s3967_s21 + $0x78] sm:$0xff] %v4294_v50  ;;  %v1088_v25 = vmul.f32 %v4247_v63, %v4247_v63  ;;  %v1464_v26 = vmul.f32 %v4240_v43, %v4240_v43  ;;  %v1089_v34 = vmul.f32 %v4275_v1, %v4275_v1 }
 0x169   : > { %1819 = vadd.xlane.f32.xlu1 %v1792_v28  ;;  %2512 = vst [vmem:[%s3959_s20 + $0x78] sm:$0xff] %v1057_v23  ;;  %v1090_v52 = vmul.f32 %v4289_v41, %v4289_v41  ;;  %v1466_v16 = vmul.f32 %v4281_v9, %v4281_v9  ;;  %v1467_v61 = vmul.f32 %v4303_v40, %v4303_v40  ;;  %s3530_s20 = sshll.u32 %s3623_s14, 4  ;;  %s3531_s20 = int_to_ptr.vmem [resolvable:$false] %s3530_s20 }
 0x16a   : > { %v1785_v28 = vmul.f32 %v4024_v5, %v4024_v5  ;;  %v1786_v23 = vmul.f32 %v4038_v13, %v4038_v13  ;;  %v1788_v5 = vmul.f32 %v4090_v46, %v4090_v46  ;;  %v1795_v13 = vmul.f32 %v4278_v17, %v4278_v17  ;;  %v2127_v46 = vld [vmem:[%s4350_s19 + $0x8] sm:$0xff]  ;;  %s3532_s18 = scalar_lea.vmem %s3531_s20, 4096  ;;  %p3533_p0 = scmp.lt.s32.totalorder %s4829_s8, %s3531_s20 }
 0x16b   : > { %p3534_p1 = scmp.lt.s32.totalorder %s3532_s18, %s3526_s13 }
 0x16c   : > { %1488 = vadd.xlane.f32.xlu0 %v1462_v24  ;;  %v1793_v24 = vmul.f32 %v4236_v39, %v4236_v39 }
 0x16d   : > { %1490 = vadd.xlane.f32.xlu1 %v1463_v0  ;;  %v1794_v0 = vmul.f32 %v4252_v3, %v4252_v3  ;;  %p3535_p2 = por %p3534_p1, %p3533_p0 }
 0x16f   : > { %p3536_p3 = pnand %p3535_p2, %p3529_p13 }
 0x170   : > { %1115 = vadd.xlane.f32.xlu0 %v1087_v10  ;;  %v1787_v10 = vmul.f32 %v4075_v35, %v4075_v35  ;;  %v3622_v35 = vmov 0  }
 0x171   : > { %1117 = vadd.xlane.f32.xlu1 %v1088_v25  ;;  %v1796_v25 = vmul.f32 %v4294_v50, %v4294_v50  ;;  %3072 = vset.pattern.permute.xlu0 %v3622_v35 }
 0x172   : > { %3073 = vset.pattern.permute.xlu1 %v3622_v35  ;;  %v2132_v35 = vld [vmem:[%s4350_s19 + $0x30] sm:$0xff] }
 0x174   : > { %1492 = vadd.xlane.f32.xlu0 %v1464_v26  ;;  %v2128_v26 = vld [vmem:[%s4350_s19 + $0x10] sm:$0xff] }
 0x175   : > { %1494 = vadd.xlane.f32.xlu1 %v1465_v57  ;;  %v2126_v57 = vld [vmem:[%s4350_s19] sm:$0xff] }
 0x178   : > { %1119 = vadd.xlane.f32.xlu0 %v1089_v34  ;;  %v2135_v34 = vld [vmem:[%s4350_s19 + $0x48] sm:$0xff] }
 0x179   : > { %1121 = vadd.xlane.f32.xlu1 %v1090_v52  ;;  %v2129_v52 = vld [vmem:[%s4350_s19 + $0x18] sm:$0xff] }
 0x17c   : > { %1496 = vadd.xlane.f32.xlu0 %v1466_v16  ;;  %v2137_v16 = vld [vmem:[%s4350_s19 + $0x58] sm:$0xff] }
 0x17d   : > { %1498 = vadd.xlane.f32.xlu1 %v1467_v61  ;;  %v2130_v61 = vld [vmem:[%s4350_s19 + $0x20] sm:$0xff] }
 0x180   : > { %1805 = vadd.xlane.f32.xlu0 %v1785_v28  ;;  %v2139_v28 = vld [vmem:[%s4350_s19 + $0x68] sm:$0xff] }
 0x181   : > { %1807 = vadd.xlane.f32.xlu1 %v1786_v23 }
 0x184   : > { %1821 = vadd.xlane.f32.xlu0 %v1793_v24  ;;  %v2131_v24 = vld [vmem:[%s4350_s19 + $0x28] sm:$0xff] }
 0x185   : > { %1823 = vadd.xlane.f32.xlu1 %v1794_v0 }
 0x188   : > { %1809 = vadd.xlane.f32.xlu0 %v1787_v10 }
 0x189   : > { %1811 = vadd.xlane.f32.xlu1 %v1788_v5 }
 0x18c   : > { %1825 = vadd.xlane.f32.xlu0 %v1795_v13  ;;  %v2141_v13 = vld [vmem:[%s4350_s19 + $0x78] sm:$0xff] }
 0x18d   : > { %1827 = vadd.xlane.f32.xlu1 %v1796_v25 }
 0x19e   : > { %2149 = vperm.xlu1 %3073, %v2127_v46  }
 0x1a2   : > { %2144 = vperm.xlu0 %3072, %v2126_v57   ;;  %2154 = vperm.xlu1 %3073, %v2128_v26  }
 0x1a6   : > { %2189 = vperm.xlu0 %3072, %v2135_v34   ;;  %2159 = vperm.xlu1 %3073, %v2129_v52   ;;  %v2133_v52 = vld [vmem:[%s4350_s19 + $0x38] sm:$0xff] }
 0x1aa   : > { %2199 = vperm.xlu0 %3072, %v2137_v16   ;;  %2164 = vperm.xlu1 %3073, %v2130_v61  }
 0x1ae   : > { %2209 = vperm.xlu0 %3072, %v2139_v28   ;;  %2169 = vperm.xlu1 %3073, %v2131_v24   ;;  %v2134_v24 = vld [vmem:[%s4350_s19 + $0x40] sm:$0xff] }
 0x1b2   : > { %2219 = vperm.xlu0 %3072, %v2141_v13   ;;  %2174 = vperm.xlu1 %3073, %v2132_v35  }
 0x1b6   : > { %2179 = vperm.xlu1 %3073, %v2133_v52  }
 0x1ba   : > { %2184 = vperm.xlu1 %3073, %v2134_v24  }
 0x1bd   : > { %v1092_v23 = vpop.xlane.xlu0 %1091 }
 0x1be   : > { %v1123_v0 = vmax.f32 %v1092_v23, 1e-24  ;;  %v1469_v10 = vpop.xlane.xlu1 %1468 }
 0x1bf   : > { %v1500_v5 = vmax.f32 %v1469_v10, 1e-24 }
 0x1c0   : > { %3202 = vrsqrt.f32 %v1123_v0 }
 0x1c1   : > { %v1798_v25 = vpop.xlane.xlu0 %1797  ;;  %3204 = vrsqrt.f32 %v1500_v5 }
 0x1c2   : > { %v1829_v46 = vmax.f32 %v1798_v25, 1e-24  ;;  %v1800_v26 = vpop.xlane.xlu1 %1799 }
 0x1c3   : > { %v1830_v57 = vmax.f32 %v1800_v26, 1e-24 }
 0x1c4   : > { %3206 = vrsqrt.f32 %v1829_v46  ;;  %v2136_v46 = vld [vmem:[%s4350_s19 + $0x50] sm:$0xff] }
 0x1c5   : > { %3208 = vrsqrt.f32 %v1830_v57  ;;  %v1094_v34 = vpop.xlane.xlu0 %1093  ;;  %2194 = vperm.xlu1 %3073, %v2136_v46  }
 0x1c6   : > { %v1124_v16 = vmax.f32 %v1094_v34, 1e-24  ;;  %v1471_v61 = vpop.xlane.xlu1 %1470 }
 0x1c7   : > { %v1501_v28 = vmax.f32 %v1471_v61, 1e-24 }
 0x1c8   : > { %3210 = vrsqrt.f32 %v1124_v16 }
 0x1c9   : > { %3212 = vrsqrt.f32 %v1501_v28  ;;  %v1096_v23 = vpop.xlane.xlu0 %1095 }
 0x1ca   : > { %v1125_v0 = vmax.f32 %v1096_v23, 1e-24  ;;  %v1098_v10 = vpop.xlane.xlu1 %1097  ;;  %v3203_v5 = vpop.eup %3202 }
 0x1cb   : > { %v1126_v25 = vmax.f32 %v1098_v10, 1e-24  ;;  %v3205_v13 = vpop.eup %3204  ;;  %v1155_v23 = vmul.f32 50.0, %v3203_v5 }
 0x1cc   : > { %3214 = vrsqrt.f32 %v1125_v0  ;;  %v2138_v0 = vld [vmem:[%s4350_s19 + $0x60] sm:$0xff]  ;;  %v1532_v50 = vmul.f32 50.0, %v3205_v13 }
 0x1cd   : > { %3216 = vrsqrt.f32 %v1126_v25  ;;  %v1802_v35 = vpop.xlane.xlu0 %1801  ;;  %2204 = vperm.xlu1 %3073, %v2138_v0   ;;  %v1171_v5 = vmul.f32 %v1155_v23, %v3950_v29 }
 0x1ce   : > { %v3207_v26 = vpop.eup %3206  ;;  %v1831_v57 = vmax.f32 %v1802_v35, 1e-24  ;;  %v1804_v34 = vpop.xlane.xlu1 %1803 }
 0x1cf   : > { %v3209_v61 = vpop.eup %3208  ;;  %v1861_v16 = vmul.f32 50.0, %v3207_v26  ;;  %v1832_v52 = vmax.f32 %v1804_v34, 1e-24 }
 0x1d0   : > { %v1862_v28 = vmul.f32 50.0, %v3209_v61  ;;  %3218 = vrsqrt.f32 %v1831_v57 }
 0x1d1   : > { %v4367_v10 = vmul.f32 %v1861_v16, %v3953_v30  ;;  %3220 = vrsqrt.f32 %v1832_v52  ;;  %v1473_v24 = vpop.xlane.xlu0 %1472  ;;  %v2140_v16 = vld [vmem:[%s4350_s19 + $0x70] sm:$0xff]  ;;  %v1548_v52 = vmul.f32 %v1532_v50, %v3962_v33 }
 0x1d2   : > { %v3211_v25 = vpop.eup %3210  ;;  %v4371_v17 = vmul.f32 %v1862_v28, %v3972_v37  ;;  %v1502_v35 = vmax.f32 %v1473_v24, 1e-24  ;;  %v1475_v3 = vpop.xlane.xlu1 %1474  ;;  %2214 = vperm.xlu1 %3073, %v2140_v16  }
 0x1d3   : > { %v3213_v26 = vpop.eup %3212  ;;  %v1156_v34 = vmul.f32 50.0, %v3211_v25  ;;  %v1503_v61 = vmax.f32 %v1475_v3, 1e-24 }
 0x1d4   : > { %v1533_v57 = vmul.f32 50.0, %v3213_v26  ;;  %3222 = vrsqrt.f32 %v1502_v35 }
 0x1d5   : > { %v1172_v46 = vmul.f32 %v1156_v34, %v3986_v44  ;;  %3224 = vrsqrt.f32 %v1503_v61  ;;  %v1100_v13 = vpop.xlane.xlu0 %1099 }
 0x1d6   : > { %v3215_v37 = vpop.eup %3214  ;;  %v1549_v28 = vmul.f32 %v1533_v57, %v3989_v45  ;;  %v1127_v24 = vmax.f32 %v1100_v13, 1e-24  ;;  %v1102_v3 = vpop.xlane.xlu1 %1101 }
 0x1d7   : > { %v3217_v25 = vpop.eup %3216  ;;  %v1157_v35 = vmul.f32 50.0, %v3215_v37  ;;  %v1128_v26 = vmax.f32 %v1102_v3, 1e-24  ;;  %v1187_v39 = vpack.c.bf16 %v1172_v46, %v1171_v5 }
 0x1d8   : > { %v1158_v30 = vmul.f32 50.0, %v3217_v25  ;;  %3226 = vrsqrt.f32 %v1127_v24  ;;  %v1564_v0 = vpack.c.bf16 %v1549_v28, %v1548_v52 }
 0x1d9   : > { %v1173_v29 = vmul.f32 %v1157_v35, %v3994_v49  ;;  %3228 = vrsqrt.f32 %v1128_v26  ;;  %2928 = vmatprep.mubr.bf16.mxu0 %v1187_v39  ;;  %v1477_v44 = vpop.xlane.xlu0 %1476 }
 0x1da   : > { %v3219_v23 = vpop.eup %3218  ;;  %v1174_v33 = vmul.f32 %v1158_v30, %v4008_v60  ;;  %v1504_v50 = vmax.f32 %v1477_v44, 1e-24  ;;  %2960 = vmatprep.mubr.bf16.mxu1 %v1564_v0  ;;  %v1479_v45 = vpop.xlane.xlu1 %1478 }
 0x1db   : > { %v3221_v34 = vpop.eup %3220  ;;  %v1863_v61 = vmul.f32 50.0, %v3219_v23  ;;  %v1505_v57 = vmax.f32 %v1479_v45, 1e-24 }
 0x1dc   : > { %v1188_v13 = vpack.c.bf16 %v1174_v33, %v1173_v29  ;;  %v1864_v5 = vmul.f32 50.0, %v3221_v34  ;;  %3230 = vrsqrt.f32 %v1504_v50 }
 0x1dd   : > { %v4383_v46 = vmul.f32 %v1863_v61, %v3997_v51  ;;  %3232 = vrsqrt.f32 %v1505_v57  ;;  %v1104_v49 = vpop.xlane.xlu0 %1103 }
 0x1de   : > { %v3223_v16 = vpop.eup %3222  ;;  %v4386_v39 = vmul.f32 %v1864_v5, %v4005_v58  ;;  %v1129_v37 = vmax.f32 %v1104_v49, 1e-24  ;;  %v1106_v60 = vpop.xlane.xlu1 %1105  ;;  %2929 = vmatmul.mubr.bf16.vlgmr.msra.gmra.mrb[32].mxu0 %v1188_v13 }
 0x1df   : > { %v3225_v30 = vpop.eup %3224  ;;  %v1534_v52 = vmul.f32 50.0, %v3223_v16  ;;  %v1130_v28 = vmax.f32 %v1106_v60, 1e-24  ;;  %2977 = vmatpush3.bf16.msra.mxu0 %v4029_v7 }
 0x1e0   : > { %v1894_v24 = vpack.c.bf16 %v4386_v39, %v4383_v46  ;;  %v1535_v3 = vmul.f32 50.0, %v3225_v30  ;;  %3234 = vrsqrt.f32 %v1129_v37  ;;  %2978 = vmatprep.subr.bf16.mxu0 %v4058_v20  ;;  %v5015_v39 = vld [vmem:[#allocation15_spill] sm:$0xff] }
 0x1e1   : > { %v1550_v51 = vmul.f32 %v1534_v52, %v4033_v11  ;;  %3236 = vrsqrt.f32 %v1130_v28  ;;  %v1481_v58 = vpop.xlane.xlu0 %1480 }
 0x1e2   : > { %v3227_v25 = vpop.eup %3226  ;;  %v1551_v35 = vmul.f32 %v1535_v3, %v4042_v15  ;;  %v1506_v26 = vmax.f32 %v1481_v58, 1e-24  ;;  %v1483_v0 = vpop.xlane.xlu1 %1482 }
 0x1e3   : > { %v3229_v29 = vpop.eup %3228  ;;  %v1159_v44 = vmul.f32 50.0, %v3227_v25  ;;  %v1507_v23 = vmax.f32 %v1483_v0, 1e-24  ;;  %2979 = vmatpush3.bf16.msra.mxu0 %v4058_v20 }
 0x1e4   : > { %v1565_v33 = vpack.c.bf16 %v1551_v35, %v1550_v51  ;;  %v1160_v50 = vmul.f32 50.0, %v3229_v29  ;;  %3238 = vrsqrt.f32 %v1506_v26  ;;  %2980 = vmatprep.subr.bf16.mxu0 %v4080_v38 }
 0x1e5   : > { %v1175_v45 = vmul.f32 %v1159_v44, %v4051_v19  ;;  %3240 = vrsqrt.f32 %v1507_v23  ;;  %v1108_v11 = vpop.xlane.xlu0 %1107 }
 0x1e6   : > { %v3231_v34 = vpop.eup %3230  ;;  %v1176_v61 = vmul.f32 %v1160_v50, %v4067_v22  ;;  %v1131_v15 = vmax.f32 %v1108_v11, 1e-24  ;;  %v1110_v57 = vpop.xlane.xlu1 %1109  ;;  %2961 = vmatmul.mubr.bf16.vlgmr.msra.gmra.mrb[32].mxu1 %v1565_v33 }
 0x1e7   : > { %v3233_v13 = vpop.eup %3232  ;;  %v1536_v5 = vmul.f32 50.0, %v3231_v34  ;;  %v1132_v49 = vmax.f32 %v1110_v57, 1e-24  ;;  %3016 = vmatpush3.bf16.msra.mxu1 %v4029_v7  ;;  %2981 = vmatpush3.bf16.msra.mxu0 %v4080_v38 }
 0x1e8   : > { %v1537_v16 = vmul.f32 50.0, %v3233_v13  ;;  %3242 = vrsqrt.f32 %v1131_v15  ;;  %v1189_v37 = vpack.c.bf16 %v1176_v61, %v1175_v45  ;;  %3009 = vmatprep.subr.bf16.mxu1 %v4058_v20  ;;  %2982 = vmatprep.subr.bf16.mxu0 %v4110_v54 }
 0x1e9   : > { %v1552_v19 = vmul.f32 %v1536_v5, %v4085_v42  ;;  %3244 = vrsqrt.f32 %v1132_v49  ;;  %v4403_v22 = vpop.xlane.xlu0 %1813 }
 0x1ea   : > { %v3235_v60 = vpop.eup %3234  ;;  %v1553_v30 = vmul.f32 %v1537_v16, %v4094_v48  ;;  %v4406_v52 = vpop.xlane.xlu1 %1815  ;;  %2932 = vmatprep.mubr.bf16.mxu0 %v1189_v37 }
 0x1eb   : > { %v3237_v7 = vpop.eup %3236  ;;  %v1161_v28 = vmul.f32 50.0, %v3235_v60  ;;  %3017 = vmatpush3.bf16.msra.mxu1 %v4058_v20  ;;  %2983 = vmatpush3.bf16.msra.mxu0 %v4110_v54 }
 0x1ec   : > { %v1162_v3 = vmul.f32 50.0, %v3237_v7  ;;  %v1566_v51 = vpack.c.bf16 %v1553_v30, %v1552_v19  ;;  %3010 = vmatprep.subr.bf16.mxu1 %v4080_v38  ;;  %2984 = vmatprep.subr.bf16.mxu0 %v4134_v2 }
 0x1ed   : > { %v1177_v42 = vmul.f32 %v1161_v28, %v4103_v53  ;;  %v1485_v58 = vpop.xlane.xlu0 %1484 }
 0x1ee   : > { %v3239_v25 = vpop.eup %3238  ;;  %v1178_v48 = vmul.f32 %v1162_v3, %v4119_v56  ;;  %v1508_v35 = vmax.f32 %v1485_v58, 1e-24  ;;  %v1487_v26 = vpop.xlane.xlu1 %1486  ;;  %2964 = vmatprep.mubr.bf16.mxu1 %v1566_v51 }
 0x1ef   : > { %v3241_v0 = vpop.eup %3240  ;;  %v1538_v29 = vmul.f32 50.0, %v3239_v25  ;;  %v1509_v20 = vmax.f32 %v1487_v26, 1e-24  ;;  %3018 = vmatpush3.bf16.msra.mxu1 %v4080_v38  ;;  %2985 = vmatpush3.bf16.msra.mxu0 %v4134_v2 }
 0x1f0   : > { %v1539_v44 = vmul.f32 50.0, %v3241_v0  ;;  %3246 = vrsqrt.f32 %v1508_v35  ;;  %v1190_v23 = vpack.c.bf16 %v1178_v48, %v1177_v42  ;;  %3011 = vmatprep.subr.bf16.mxu1 %v4110_v54  ;;  %2986 = vmatprep.subr.bf16.mxu0 %v4164_v27  ;;  %v1837_v0 = vmax.f32 %v4403_v22, 1e-24 }
 0x1f1   : > { %v1554_v53 = vmul.f32 %v1538_v29, %v4139_v8  ;;  %3248 = vrsqrt.f32 %v1509_v20  ;;  %v1112_v56 = vpop.xlane.xlu0 %1111  ;;  %v5007_v29 = vld [vmem:[#allocation13_spill] sm:$0xff] }
 0x1f2   : > { %v3243_v33 = vpop.eup %3242  ;;  %v1555_v50 = vmul.f32 %v1539_v44, %v4148_v14  ;;  %v1133_v45 = vmax.f32 %v1112_v56, 1e-24  ;;  %v1114_v11 = vpop.xlane.xlu1 %1113  ;;  %2933 = vmatmul.mubr.bf16.gmra.mrb[36].mxu0 %v1190_v23  ;;  %v1838_v23 = vmax.f32 %v4406_v52, 1e-24 }
 0x1f3   : > { %v3245_v38 = vpop.eup %3244  ;;  %v1163_v34 = vmul.f32 50.0, %v3243_v33  ;;  %v1134_v61 = vmax.f32 %v1114_v11, 1e-24  ;;  %3019 = vmatpush3.bf16.msra.mxu1 %v4110_v54  ;;  %2987 = vmatpush3.bf16.msra.mxu0 %v4164_v27 }
 0x1f4   : > { %v1164_v15 = vmul.f32 50.0, %v3245_v38  ;;  %3250 = vrsqrt.f32 %v1133_v45  ;;  %v1567_v57 = vpack.c.bf16 %v1555_v50, %v1554_v53  ;;  %3012 = vmatprep.subr.bf16.mxu1 %v4134_v2  ;;  %2988 = vmatprep.subr.bf16.mxu0 %v4188_v47 }
 0x1f5   : > { %v1179_v8 = vmul.f32 %v1163_v34, %v4157_v21  ;;  %3252 = vrsqrt.f32 %v1134_v61  ;;  %v4425_v14 = vpop.xlane.xlu0 %1817 }
 0x1f6   : > { %v1180_v13 = vmul.f32 %v1164_v15, %v4173_v31  ;;  %v4428_v5 = vpop.xlane.xlu1 %1819  ;;  %2965 = vmatmul.mubr.bf16.gmra.mrb[36].mxu1 %v1567_v57  ;;  %v1839_v61 = vmax.f32 %v4425_v14, 1e-24 }
 0x1f7   : > { %3020 = vmatpush3.bf16.msra.mxu1 %v4134_v2  ;;  %2989 = vmatpush3.bf16.msra.mxu0 %v4188_v47 }
 0x1f8   : > { %v1191_v54 = vpack.c.bf16 %v1180_v13, %v1179_v8  ;;  %3013 = vmatprep.subr.bf16.mxu1 %v4164_v27  ;;  %2990 = vmatprep.subr.bf16.mxu0 %v4213_v4 }
 0x1f9   : > { %v1489_v49 = vpop.xlane.xlu0 %1488 }
 0x1fa   : > { %v3247_v16 = vpop.eup %3246  ;;  %v1510_v21 = vmax.f32 %v1489_v49, 1e-24  ;;  %v1491_v37 = vpop.xlane.xlu1 %1490  ;;  %2936 = vmatprep.mubr.bf16.mxu0 %v1191_v54  ;;  %v1840_v54 = vmax.f32 %v4428_v5, 1e-24 }
 0x1fb   : > { %v3249_v19 = vpop.eup %3248  ;;  %v1540_v60 = vmul.f32 50.0, %v3247_v16  ;;  %v1511_v31 = vmax.f32 %v1491_v37, 1e-24  ;;  %3021 = vmatpush3.bf16.msra.mxu1 %v4164_v27  ;;  %2991 = vmatpush3.bf16.msra.mxu0 %v4213_v4 }
 0x1fc   : > { %v1541_v2 = vmul.f32 50.0, %v3249_v19  ;;  %3254 = vrsqrt.f32 %v1510_v21  ;;  %3014 = vmatprep.subr.bf16.mxu1 %v4188_v47 }
 0x1fd   : > { %v1556_v30 = vmul.f32 %v1540_v60, %v4219_v6  ;;  %3256 = vrsqrt.f32 %v1511_v31  ;;  %v1116_v7 = vpop.xlane.xlu0 %1115 }
 0x1fe   : > { %v3251_v28 = vpop.eup %3250  ;;  %v1557_v3 = vmul.f32 %v1541_v2, %v4224_v12  ;;  %v1135_v51 = vmax.f32 %v1116_v7, 1e-24  ;;  %v1118_v42 = vpop.xlane.xlu1 %1117 }
 0x1ff   : > { %v3253_v58 = vpop.eup %3252  ;;  %v1165_v25 = vmul.f32 50.0, %v3251_v28  ;;  %v1136_v48 = vmax.f32 %v1118_v42, 1e-24  ;;  %3022 = vmatpush3.bf16.msra.mxu1 %v4188_v47 }
 0x200   : > { %v1166_v27 = vmul.f32 50.0, %v3253_v58  ;;  %3258 = vrsqrt.f32 %v1135_v51  ;;  %v1568_v35 = vpack.c.bf16 %v1557_v3, %v1556_v30  ;;  %3015 = vmatprep.subr.bf16.mxu1 %v4213_v4 }
 0x201   : > { %v1181_v26 = vmul.f32 %v1165_v25, %v4230_v32  ;;  %3260 = vrsqrt.f32 %v1136_v48  ;;  %v1493_v6 = vpop.xlane.xlu0 %1492 }
 0x202   : > { %v1182_v12 = vmul.f32 %v1166_v27, %v5007_v29  ;;  %v1512_v20 = vmax.f32 %v1493_v6, 1e-24  ;;  %v1495_v44 = vpop.xlane.xlu1 %1494  ;;  %2968 = vmatprep.mubr.bf16.mxu1 %v1568_v35 }
 0x203   : > { %v1513_v53 = vmax.f32 %v1495_v44, 1e-24  ;;  %3023 = vmatpush3.bf16.msra.mxu1 %v4213_v4 }
 0x204   : > { %3262 = vrsqrt.f32 %v1512_v20  ;;  %v1192_v47 = vpack.c.bf16 %v1182_v12, %v1181_v26 }
 0x205   : > { %3264 = vrsqrt.f32 %v1513_v53  ;;  %v1120_v56 = vpop.xlane.xlu0 %1119 }
 0x206   : > { %v3255_v33 = vpop.eup %3254  ;;  %3266 = vrsqrt.f32 %v1837_v0  ;;  %v1137_v32 = vmax.f32 %v1120_v56, 1e-24  ;;  %v1122_v50 = vpop.xlane.xlu1 %1121  ;;  %2937 = vmatmul.mubr.bf16.gmra.mrb[40].mxu0 %v1192_v47 }
 0x207   : > { %v3257_v22 = vpop.eup %3256  ;;  %3268 = vrsqrt.f32 %v1838_v23  ;;  %v1542_v45 = vmul.f32 50.0, %v3255_v33  ;;  %v1138_v11 = vmax.f32 %v1122_v50, 1e-24 }
 0x208   : > { %v1543_v38 = vmul.f32 50.0, %v3257_v22  ;;  %3270 = vrsqrt.f32 %v1137_v32 }
 0x209   : > { %v1558_v52 = vmul.f32 %v1542_v45, %v4286_v55  ;;  %3272 = vrsqrt.f32 %v1138_v11  ;;  %v1497_v34 = vpop.xlane.xlu0 %1496  ;;  %v5008_v11 = vld [vmem:[#allocation8_spill] sm:$0xff] }
 0x20a   : > { %v3259_v4 = vpop.eup %3258  ;;  %v1559_v15 = vmul.f32 %v1543_v38, %v4298_v18  ;;  %v1514_v57 = vmax.f32 %v1497_v34, 1e-24  ;;  %v1499_v8 = vpop.xlane.xlu1 %1498 }
 0x20b   : > { %v3261_v13 = vpop.eup %3260  ;;  %v1167_v49 = vmul.f32 50.0, %v3259_v4  ;;  %v1515_v16 = vmax.f32 %v1499_v8, 1e-24 }
 0x20c   : > { %v1168_v21 = vmul.f32 50.0, %v3261_v13  ;;  %3274 = vrsqrt.f32 %v1514_v57  ;;  %v1569_v37 = vpack.c.bf16 %v1559_v15, %v1558_v52  ;;  %v5009_v52 = vld [vmem:[#allocation9_spill] sm:$0xff] }
 0x20d   : > { %v1183_v19 = vmul.f32 %v1167_v49, %v4233_v62  ;;  %3276 = vrsqrt.f32 %v1515_v16  ;;  %v1806_v55 = vpop.xlane.xlu0 %1805  ;;  %v5010_v16 = vpack.c.bf16 %v4371_v17, %v4367_v10 }
 0x20e   : > { %v3263_v60 = vpop.eup %3262  ;;  %3278 = vrsqrt.f32 %v1839_v61  ;;  %v1184_v14 = vmul.f32 %v1168_v21, %v4247_v63  ;;  %v1833_v31 = vmax.f32 %v1806_v55, 1e-24  ;;  %v1808_v18 = vpop.xlane.xlu1 %1807  ;;  %2969 = vmatmul.mubr.bf16.gmra.mrb[40].mxu1 %v1569_v37 }
 0x20f   : > { %v3265_v2 = vpop.eup %3264  ;;  %3280 = vrsqrt.f32 %v1840_v54  ;;  %v1544_v30 = vmul.f32 50.0, %v3263_v60  ;;  %v1834_v5 = vmax.f32 %v1808_v18, 1e-24 }
 0x210   : > { %v3267_v7 = vpop.eup %3266  ;;  %v1545_v28 = vmul.f32 50.0, %v3265_v2  ;;  %3282 = vrsqrt.f32 %v1833_v31  ;;  %v1193_v3 = vpack.c.bf16 %v1184_v14, %v1183_v19  ;;  %v3522_v19 = vld [vmem:[%s3967_s21 + $0x20] sm:$0xff]  ;;  %v3523_v14 = vld [vmem:[%s3967_s21 + $0x28] sm:$0xff] }
 0x211   : > { %v3269_v51 = vpop.eup %3268  ;;  %v1560_v62 = vmul.f32 %v1544_v30, %v4240_v43  ;;  %3284 = vrsqrt.f32 %v1834_v5  ;;  %v1822_v42 = vpop.xlane.xlu0 %1821  ;;  %v1869_v29 = vmul.f32 50.0, %v3267_v7  ;;  %v5011_v30 = vld [vmem:[#allocation10_spill] sm:$0xff] }
 0x212   : > { %v3271_v58 = vpop.eup %3270  ;;  %v1561_v25 = vmul.f32 %v1545_v28, %v4261_v36  ;;  %v1841_v63 = vmax.f32 %v1822_v42, 1e-24  ;;  %v1824_v48 = vpop.xlane.xlu1 %1823  ;;  %2940 = vmatprep.mubr.bf16.mxu0 %v1193_v3  ;;  %v1870_v12 = vmul.f32 50.0, %v3269_v51  ;;  %v5012_v28 = vld [vmem:[#allocation11_spill] sm:$0xff] }
 0x213   : > { %v3273_v27 = vpop.eup %3272  ;;  %v1169_v35 = vmul.f32 50.0, %v3271_v58  ;;  %v1842_v26 = vmax.f32 %v1824_v48, 1e-24  ;;  %v1885_v38 = vmul.f32 %v1869_v29, %v5008_v11 }
 0x214   : > { %v1170_v6 = vmul.f32 50.0, %v3273_v27  ;;  %3286 = vrsqrt.f32 %v1841_v63  ;;  %v1570_v0 = vpack.c.bf16 %v1561_v25, %v1560_v62  ;;  %v5013_v62 = vld [vmem:[#allocation12_spill] sm:$0xff] }
 0x215   : > { %v1185_v20 = vmul.f32 %v1169_v35, %v4275_v1  ;;  %3288 = vrsqrt.f32 %v1842_v26  ;;  %v1810_v43 = vpop.xlane.xlu0 %1809  ;;  %v1886_v1 = vmul.f32 %v1870_v12, %v5009_v52  ;;  %v3524_v35 = vld [vmem:[%s3967_s21 + $0x30] sm:$0xff] }
 0x216   : > { %v3275_v44 = vpop.eup %3274  ;;  %v1186_v23 = vmul.f32 %v1170_v6, %v4289_v41  ;;  %v1835_v53 = vmax.f32 %v1810_v43, 1e-24  ;;  %v1812_v36 = vpop.xlane.xlu1 %1811  ;;  %2972 = vmatprep.mubr.bf16.mxu1 %v1570_v0  ;;  %v3525_v6 = vld [vmem:[%s3967_s21 + $0x38] sm:$0xff] }
 0x217   : > { %v3277_v47 = vpop.eup %3276  ;;  %v1546_v56 = vmul.f32 50.0, %v3275_v44  ;;  %v1836_v33 = vmax.f32 %v1812_v36, 1e-24  ;;  %v5014_v44 = vld [vmem:[#allocation14_spill] sm:$0xff] }
 0x218   : > { %v3279_v32 = vpop.eup %3278  ;;  %v1547_v50 = vmul.f32 50.0, %v3277_v47  ;;  %3290 = vrsqrt.f32 %v1835_v53  ;;  %v1194_v22 = vpack.c.bf16 %v1186_v23, %v1185_v20 }
 0x219   : > { %v3281_v45 = vpop.eup %3280  ;;  %v1562_v34 = vmul.f32 %v1546_v56, %v4281_v9  ;;  %3292 = vrsqrt.f32 %v1836_v33  ;;  %v1826_v41 = vpop.xlane.xlu0 %1825  ;;  %v1871_v13 = vmul.f32 50.0, %v3279_v32 }
 0x21a   : > { %v3283_v4 = vpop.eup %3282  ;;  %v1563_v61 = vmul.f32 %v1547_v50, %v4303_v40  ;;  %v1843_v15 = vmax.f32 %v1826_v41, 1e-24  ;;  %v1828_v57 = vpop.xlane.xlu1 %1827  ;;  %2941 = vmatmul.mubr.bf16.gmra.mrb[44].mxu0 %v1194_v22  ;;  %v1872_v21 = vmul.f32 50.0, %v3281_v45  ;;  %v1897_v40 = vpack.c.bf16 %v1886_v1, %v1885_v38 }
 0x21b   : > { %v3285_v8 = vpop.eup %3284  ;;  %v1865_v54 = vmul.f32 50.0, %v3283_v4  ;;  %v1844_v49 = vmax.f32 %v1828_v57, 1e-24  ;;  %2992 = vmatprep.mubr.bf16.mxu0 %v5010_v16  ;;  %v1887_v5 = vmul.f32 %v1871_v13, %v5011_v30 }
 0x21c   : > { %v1866_v9 = vmul.f32 50.0, %v3285_v8  ;;  %3294 = vrsqrt.f32 %v1843_v15  ;;  %v1571_v37 = vpack.c.bf16 %v1563_v61, %v1562_v34  ;;  %v1888_v17 = vmul.f32 %v1872_v21, %v4197_v59 }
 0x21d   : > { %v1881_v55 = vmul.f32 %v3522_v19, %v1865_v54  ;;  %3296 = vrsqrt.f32 %v1844_v49 }
 0x21e   : > { %v3287_v60 = vpop.eup %3286  ;;  %v1882_v31 = vmul.f32 %v3523_v14, %v1866_v9  ;;  %2973 = vmatmul.mubr.bf16.gmra.mrb[44].mxu1 %v1571_v37  ;;  %v1898_v63 = vpack.c.bf16 %v1888_v17, %v1887_v5 }
 0x21f   : > { %v3289_v18 = vpop.eup %3288  ;;  %v1873_v2 = vmul.f32 50.0, %v3287_v60  ;;  %3000 = vmatprep.mubr.bf16.mxu1 %v1897_v40 }
 0x220   : > { %v1874_v10 = vmul.f32 50.0, %v3289_v18  ;;  %v1895_v7 = vpack.c.bf16 %v1882_v31, %v1881_v55 }
 0x221   : > { %v1889_v3 = vmul.f32 %v1873_v2, %v5012_v28 }
 0x222   : > { %v3291_v51 = vpop.eup %3290  ;;  %v1890_v42 = vmul.f32 %v1874_v10, %v5013_v62  ;;  %2993 = vmatmul.mubr.bf16.vlgmr.msra.gmra.mrb[48].mxu0 %v1894_v24 }
 0x223   : > { %v3293_v58 = vpop.eup %3292  ;;  %v1867_v25 = vmul.f32 50.0, %v3291_v51  ;;  %2996 = vmatprep.mubr.bf16.mxu0 %v1895_v7 }
 0x224   : > { %v1868_v48 = vmul.f32 50.0, %v3293_v58  ;;  %v1899_v27 = vpack.c.bf16 %v1890_v42, %v1889_v3 }
 0x225   : > { %v1883_v59 = vmul.f32 %v3524_v35, %v1867_v25 }
 0x226   : > { %v3295_v26 = vpop.eup %3294  ;;  %v1884_v0 = vmul.f32 %v3525_v6, %v1868_v48  ;;  %3001 = vmatmul.mubr.bf16.vlgmr.msra.gmra.mrb[48].mxu1 %v1898_v63 }
 0x227   : > { %v3297_v29 = vpop.eup %3296  ;;  %v1875_v12 = vmul.f32 50.0, %v3295_v26  ;;  %3004 = vmatprep.mubr.bf16.mxu1 %v1899_v27 }
 0x228   : > { %v1876_v20 = vmul.f32 50.0, %v3297_v29  ;;  %v1896_v43 = vpack.c.bf16 %v1884_v0, %v1883_v59 }
 0x229   : > { %v1891_v46 = vmul.f32 %v1875_v12, %v5014_v44 }
 0x22a   : > { %v1892_v24 = vmul.f32 %v1876_v20, %v5015_v39  ;;  %2997 = vmatmul.mubr.bf16.gmra.mrb[52].mxu0 %v1896_v43 }
 0x22c   : > { %v1900_v23 = vpack.c.bf16 %v1892_v24, %v1891_v46 }
 0x22e   : > { %3005 = vmatmul.mubr.bf16.gmra.mrb[52].mxu1 %v1900_v23 }
 0x2b1   : > { %v2930_v53 = vpop.f32.mrb[32].mxu0 }
 0x2b2   : > { %v2791_v36 = vmul.f32 -1.442695, %v2930_v53  ;;  %v1277_v47 = vpop.f32.mrb[33].mxu0 }
 0x2b3   : > { %v2789_v56 = vmul.f32 -1.442695, %v1277_v47  ;;  %v2931_v33 = vpop.f32.mrb[34].mxu0 }
 0x2b4   : > { %3298 = vpow2.f32 %v2791_v36  ;;  %v2792_v32 = vmul.f32 -1.442695, %v2931_v33  ;;  %v1280_v50 = vpop.f32.mrb[35].mxu0 }
 0x2b5   : > { %3300 = vpow2.f32 %v2789_v56  ;;  %v2790_v22 = vmul.f32 -1.442695, %v1280_v50 }
 0x2b6   : > { %3302 = vpow2.f32 %v2792_v32 }
 0x2b7   : > { %3304 = vpow2.f32 %v2790_v22 }
 0x2b9   : > { %v2962_v45 = vpop.f32.mrb[32].mxu1 }
 0x2ba   : > { %v2807_v11 = vmul.f32 -1.442695, %v2962_v45  ;;  %v1606_v38 = vpop.f32.mrb[33].mxu1 }
 0x2bb   : > { %v2805_v52 = vmul.f32 -1.442695, %v1606_v38  ;;  %v2963_v1 = vpop.f32.mrb[34].mxu1 }
 0x2bc   : > { %3306 = vpow2.f32 %v2807_v11  ;;  %v2808_v34 = vmul.f32 -1.442695, %v2963_v1  ;;  %v1609_v41 = vpop.f32.mrb[35].mxu1 }
 0x2bd   : > { %3308 = vpow2.f32 %v2805_v52  ;;  %v2806_v4 = vmul.f32 -1.442695, %v1609_v41 }
 0x2be   : > { %v3299_v61 = vpop.eup %3298  ;;  %3310 = vpow2.f32 %v2808_v34 }
 0x2bf   : > { %v3301_v15 = vpop.eup %3300  ;;  %3312 = vpow2.f32 %v2806_v4  ;;  %v1390_v8 = vadd.f32 1.0, %v3299_v61 }
 0x2c0   : > { %v3303_v57 = vpop.eup %3302  ;;  %v1388_v54 = vadd.f32 1.0, %v3301_v15 }
 0x2c1   : > { %v3305_v13 = vpop.eup %3304  ;;  %v1391_v49 = vadd.f32 1.0, %v3303_v57  ;;  %3314 = vrcp.f32 %v1390_v8 }
 0x2c2   : > { %v1389_v16 = vadd.f32 1.0, %v3305_v13  ;;  %3316 = vrcp.f32 %v1388_v54 }
 0x2c3   : > { %3318 = vrcp.f32 %v1391_v49 }
 0x2c4   : > { %3320 = vrcp.f32 %v1389_v16 }
 0x2c5   : > { %v2934_v21 = vpop.f32.mrb[36].mxu0 }
 0x2c6   : > { %v3307_v9 = vpop.eup %3306  ;;  %v2795_v37 = vmul.f32 -1.442695, %v2934_v21  ;;  %v1293_v19 = vpop.f32.mrb[37].mxu0 }
 0x2c7   : > { %v3309_v55 = vpop.eup %3308  ;;  %v1719_v40 = vadd.f32 1.0, %v3307_v9  ;;  %v2935_v60 = vpop.f32.mrb[38].mxu0  ;;  %v2793_v5 = vmul.f32 -1.442695, %v1293_v19 }
 0x2c8   : > { %v3311_v14 = vpop.eup %3310  ;;  %v1717_v31 = vadd.f32 1.0, %v3309_v55  ;;  %3322 = vpow2.f32 %v2795_v37  ;;  %v1296_v18 = vpop.f32.mrb[39].mxu0  ;;  %v2796_v7 = vmul.f32 -1.442695, %v2935_v60 }
 0x2c9   : > { %v3313_v2 = vpop.eup %3312  ;;  %3324 = vrcp.f32 %v1719_v40  ;;  %v1720_v30 = vadd.f32 1.0, %v3311_v14  ;;  %v2966_v17 = vpop.f32.mrb[36].mxu1  ;;  %v2794_v3 = vmul.f32 -1.442695, %v1296_v18 }
 0x2ca   : > { %3326 = vrcp.f32 %v1717_v31  ;;  %v1718_v10 = vadd.f32 1.0, %v3313_v2  ;;  %v1622_v28 = vpop.f32.mrb[37].mxu1  ;;  %v2811_v62 = vmul.f32 -1.442695, %v2966_v17 }
 0x2cb   : > { %3328 = vrcp.f32 %v1720_v30  ;;  %v2967_v51 = vpop.f32.mrb[38].mxu1  ;;  %v2809_v58 = vmul.f32 -1.442695, %v1622_v28  ;;  %v3315_v25 = vpop.eup %3314 }
 0x2cc   : > { %3330 = vrcp.f32 %v1718_v10  ;;  %v1625_v42 = vpop.f32.mrb[39].mxu1  ;;  %v2812_v63 = vmul.f32 -1.442695, %v2967_v51  ;;  %v3317_v48 = vpop.eup %3316 }
 0x2cd   : > { %3332 = vpow2.f32 %v2793_v5  ;;  %v2810_v27 = vmul.f32 -1.442695, %v1625_v42  ;;  %v3319_v35 = vpop.eup %3318 }
 0x2ce   : > { %3334 = vpow2.f32 %v2796_v7  ;;  %v3321_v59 = vpop.eup %3320 }
 0x2cf   : > { %3336 = vpow2.f32 %v2794_v3 }
 0x2d0   : > { %3338 = vpow2.f32 %v2811_v62 }
 0x2d1   : > { %3340 = vpow2.f32 %v2809_v58 }
 0x2d2   : > { %v3323_v26 = vpop.eup %3322  ;;  %3342 = vpow2.f32 %v2812_v63 }
 0x2d3   : > { %v3325_v6 = vpop.eup %3324  ;;  %3344 = vpow2.f32 %v2810_v27  ;;  %v1394_v20 = vadd.f32 1.0, %v3323_v26 }
 0x2d4   : > { %v3327_v0 = vpop.eup %3326  ;;  %v4476_v29 = vadd.f32 %v3325_v6, %v3315_v25 }
 0x2d5   : > { %v3329_v12 = vpop.eup %3328  ;;  %v4478_v43 = vadd.f32 %v3327_v0, %v3317_v48  ;;  %3346 = vrcp.f32 %v1394_v20 }
 0x2d6   : > { %v3331_v44 = vpop.eup %3330  ;;  %v4480_v46 = vadd.f32 %v3329_v12, %v3319_v35 }
 0x2d7   : > { %v3333_v39 = vpop.eup %3332  ;;  %v4482_v24 = vadd.f32 %v3331_v44, %v3321_v59 }
 0x2d8   : > { %v3335_v23 = vpop.eup %3334  ;;  %v1392_v53 = vadd.f32 1.0, %v3333_v39 }
 0x2d9   : > { %v3337_v36 = vpop.eup %3336  ;;  %v1395_v47 = vadd.f32 1.0, %v3335_v23  ;;  %v2938_v56 = vpop.f32.mrb[40].mxu0 }
 0x2da   : > { %v3339_v33 = vpop.eup %3338  ;;  %3348 = vrcp.f32 %v1392_v53  ;;  %v1393_v32 = vadd.f32 1.0, %v3337_v36  ;;  %v1309_v50 = vpop.f32.mrb[41].mxu0  ;;  %v2799_v4 = vmul.f32 -1.442695, %v2938_v56 }
 0x2db   : > { %v3341_v22 = vpop.eup %3340  ;;  %3350 = vrcp.f32 %v1395_v47  ;;  %v1723_v45 = vadd.f32 1.0, %v3339_v33  ;;  %v2939_v11 = vpop.f32.mrb[42].mxu0  ;;  %v2797_v15 = vmul.f32 -1.442695, %v1309_v50 }
 0x2dc   : > { %v3343_v38 = vpop.eup %3342  ;;  %3352 = vrcp.f32 %v1393_v32  ;;  %v1721_v52 = vadd.f32 1.0, %v3341_v22  ;;  %v1312_v1 = vpop.f32.mrb[43].mxu0  ;;  %v2800_v57 = vmul.f32 -1.442695, %v2939_v11 }
 0x2dd   : > { %v3345_v34 = vpop.eup %3344  ;;  %3354 = vrcp.f32 %v1723_v45  ;;  %v1724_v41 = vadd.f32 1.0, %v3343_v38  ;;  %v2798_v8 = vmul.f32 -1.442695, %v1312_v1  ;;  %v4492_v32 = vpop.permute.xlu1 %2149 }
 0x2de   : > { %3356 = vrcp.f32 %v1721_v52  ;;  %v1722_v61 = vadd.f32 1.0, %v3345_v34 }
 0x2df   : > { %3358 = vrcp.f32 %v1724_v41  ;;  %v3347_v16 = vpop.eup %3346 }
 0x2e0   : > { %3360 = vrcp.f32 %v1722_v61 }
 0x2e1   : > { %3362 = vpow2.f32 %v2799_v4  ;;  %v2970_v13 = vpop.f32.mrb[40].mxu1 }
 0x2e2   : > { %3364 = vpow2.f32 %v2797_v15  ;;  %v2815_v54 = vmul.f32 -1.442695, %v2970_v13  ;;  %v1638_v49 = vpop.f32.mrb[41].mxu1 }
 0x2e3   : > { %3366 = vpow2.f32 %v2800_v57  ;;  %v2813_v21 = vmul.f32 -1.442695, %v1638_v49  ;;  %v2971_v9 = vpop.f32.mrb[42].mxu1 }
 0x2e4   : > { %v3349_v37 = vpop.eup %3348  ;;  %3368 = vpow2.f32 %v2798_v8  ;;  %v2816_v19 = vmul.f32 -1.442695, %v2971_v9  ;;  %v1641_v55 = vpop.f32.mrb[43].mxu1 }
 0x2e5   : > { %v3351_v40 = vpop.eup %3350  ;;  %3370 = vpow2.f32 %v2815_v54  ;;  %v2814_v60 = vmul.f32 -1.442695, %v1641_v55  ;;  %v4494_v54 = vpop.permute.xlu1 %2154 }
 0x2e6   : > { %v3353_v14 = vpop.eup %3352  ;;  %3372 = vpow2.f32 %v2813_v21 }
 0x2e7   : > { %v3355_v31 = vpop.eup %3354  ;;  %3374 = vpow2.f32 %v2816_v19 }
 0x2e8   : > { %v3357_v18 = vpop.eup %3356  ;;  %v4484_v2 = vadd.f32 %v3355_v31, %v3347_v16  ;;  %3376 = vpow2.f32 %v2814_v60 }
 0x2e9   : > { %v3359_v30 = vpop.eup %3358  ;;  %v4486_v5 = vadd.f32 %v3357_v18, %v3349_v37 }
 0x2ea   : > { %v3361_v17 = vpop.eup %3360  ;;  %v4488_v10 = vadd.f32 %v3359_v30, %v3351_v40 }
 0x2eb   : > { %v3363_v7 = vpop.eup %3362  ;;  %v4490_v28 = vadd.f32 %v3361_v17, %v3353_v14 }
 0x2ec   : > { %v3365_v3 = vpop.eup %3364  ;;  %v1398_v51 = vadd.f32 1.0, %v3363_v7 }
 0x2ed   : > { %v3367_v62 = vpop.eup %3366  ;;  %v1396_v42 = vadd.f32 1.0, %v3365_v3  ;;  %v2942_v58 = vpop.f32.mrb[44].mxu0 }
 0x2ee   : > { %v3369_v25 = vpop.eup %3368  ;;  %3378 = vrcp.f32 %v1398_v51  ;;  %v1399_v63 = vadd.f32 1.0, %v3367_v62  ;;  %v1325_v48 = vpop.f32.mrb[45].mxu0  ;;  %v2803_v53 = vmul.f32 -1.442695, %v2942_v58 }
 0x2ef   : > { %v3371_v27 = vpop.eup %3370  ;;  %3380 = vrcp.f32 %v1396_v42  ;;  %v1397_v35 = vadd.f32 1.0, %v3369_v25  ;;  %v2943_v59 = vpop.f32.mrb[46].mxu0  ;;  %v2801_v56 = vmul.f32 -1.442695, %v1325_v48 }
 0x2f0   : > { %v3373_v26 = vpop.eup %3372  ;;  %3382 = vrcp.f32 %v1399_v63  ;;  %v1727_v6 = vadd.f32 1.0, %v3371_v27  ;;  %v1328_v0 = vpop.f32.mrb[47].mxu0  ;;  %v2804_v50 = vmul.f32 -1.442695, %v2943_v59 }
 0x2f1   : > { %v3375_v12 = vpop.eup %3374  ;;  %3384 = vrcp.f32 %v1397_v35  ;;  %v1725_v20 = vadd.f32 1.0, %v3373_v26  ;;  %v2974_v44 = vpop.f32.mrb[44].mxu1  ;;  %v2802_v45 = vmul.f32 -1.442695, %v1328_v0 }
 0x2f2   : > { %v3377_v39 = vpop.eup %3376  ;;  %3386 = vrcp.f32 %v1727_v6  ;;  %v1728_v23 = vadd.f32 1.0, %v3375_v12  ;;  %v1654_v36 = vpop.f32.mrb[45].mxu1  ;;  %v2819_v38 = vmul.f32 -1.442695, %v2974_v44 }
 0x2f3   : > { %3388 = vrcp.f32 %v1725_v20  ;;  %v1726_v47 = vadd.f32 1.0, %v3377_v39  ;;  %v2975_v33 = vpop.f32.mrb[46].mxu1  ;;  %v2817_v1 = vmul.f32 -1.442695, %v1654_v36  ;;  %v4514_v25 = vpop.permute.xlu1 %2159 }
 0x2f4   : > { %3390 = vrcp.f32 %v1728_v23  ;;  %v1657_v22 = vpop.f32.mrb[47].mxu1  ;;  %v2820_v4 = vmul.f32 -1.442695, %v2975_v33 }
 0x2f5   : > { %3392 = vrcp.f32 %v1726_v47  ;;  %v2994_v11 = vpop.f32.mrb[48].mxu0  ;;  %v2818_v57 = vmul.f32 -1.442695, %v1657_v22 }
 0x2f6   : > { %3394 = vpow2.f32 %v2803_v53  ;;  %v1935_v52 = vpop.f32.mrb[49].mxu0  ;;  %v2823_v49 = vmul.f32 -1.442695, %v2994_v11 }
 0x2f7   : > { %3396 = vpow2.f32 %v2801_v56  ;;  %v2995_v34 = vpop.f32.mrb[50].mxu0  ;;  %v2821_v9 = vmul.f32 -1.442695, %v1935_v52  ;;  %v4524_v33 = vpop.permute.xlu1 %2164 }
 0x2f8   : > { %v3379_v41 = vpop.eup %3378  ;;  %3398 = vpow2.f32 %v2804_v50  ;;  %v1938_v61 = vpop.f32.mrb[51].mxu0  ;;  %v2824_v55 = vmul.f32 -1.442695, %v2995_v34 }
 0x2f9   : > { %v3381_v15 = vpop.eup %3380  ;;  %3400 = vpow2.f32 %v2802_v45  ;;  %v3002_v8 = vpop.f32.mrb[48].mxu1  ;;  %v2822_v31 = vmul.f32 -1.442695, %v1938_v61 }
 0x2fa   : > { %v3383_v13 = vpop.eup %3382  ;;  %3402 = vpow2.f32 %v2819_v38  ;;  %v4496_v16 = vpop.f32.mrb[49].mxu1  ;;  %v2831_v7 = vmul.f32 -1.442695, %v3002_v8 }
 0x2fb   : > { %v3385_v21 = vpop.eup %3384  ;;  %3404 = vpow2.f32 %v2817_v1  ;;  %v4498_v37 = vpop.f32.mrb[50].mxu1 }
 0x2fc   : > { %v3387_v19 = vpop.eup %3386  ;;  %3406 = vpow2.f32 %v2820_v4  ;;  %v4500_v40 = vpop.f32.mrb[51].mxu1 }
 0x2fd   : > { %v3389_v60 = vpop.eup %3388  ;;  %v4502_v14 = vadd.f32 %v3387_v19, %v3379_v41  ;;  %3408 = vpow2.f32 %v2818_v57  ;;  %v4504_v18 = vpop.f32.mrb[52].mxu0 }
 0x2fe   : > { %v3391_v30 = vpop.eup %3390  ;;  %v4506_v17 = vadd.f32 %v3389_v60, %v3381_v15  ;;  %3410 = vpow2.f32 %v2823_v49  ;;  %v4508_v3 = vpop.f32.mrb[53].mxu0 }
 0x2ff   : > { %v3393_v51 = vpop.eup %3392  ;;  %3412 = vpow2.f32 %v2821_v9  ;;  %v4510_v62 = vpop.f32.mrb[54].mxu0  ;;  %v4512_v42 = vadd.f32 %v3391_v30, %v3383_v13  ;;  %v2829_v13 = vmul.f32 -1.442695, %v4496_v16  ;;  %v2832_v9 = vmul.f32 -1.442695, %v4498_v37 }
 0x300   : > { %v3395_v58 = vpop.eup %3394  ;;  %3414 = vpow2.f32 %v2824_v55  ;;  %v4516_v63 = vpop.f32.mrb[55].mxu0  ;;  %v4518_v48 = vadd.f32 %v3393_v51, %v3385_v21  ;;  %v2830_v55 = vmul.f32 -1.442695, %v4500_v40  ;;  %v2828_v16 = vmul.f32 -1.442695, %v4510_v62 }
 0x301   : > { %v3397_v27 = vpop.eup %3396  ;;  %v1402_v35 = vadd.f32 1.0, %v3395_v58  ;;  %3416 = vpow2.f32 %v2822_v31  ;;  %v4520_v59 = vpop.f32.mrb[52].mxu1  ;;  %v2827_v31 = vmul.f32 -1.442695, %v4504_v18  ;;  %v2826_v40 = vmul.f32 -1.442695, %v4516_v63 }
 0x302   : > { %v3399_v26 = vpop.eup %3398  ;;  %v1400_v6 = vadd.f32 1.0, %v3397_v27  ;;  %3418 = vpow2.f32 %v2831_v7  ;;  %v1983_v0 = vpop.f32.mrb[53].mxu1  ;;  %v2825_v7 = vmul.f32 -1.442695, %v4508_v3  ;;  %v2835_v18 = vmul.f32 -1.442695, %v4520_v59 }
 0x303   : > { %v3401_v12 = vpop.eup %3400  ;;  %3420 = vrcp.f32 %v1402_v35  ;;  %v1403_v20 = vadd.f32 1.0, %v3399_v26  ;;  %v3007_v44 = vpop.f32.mrb[54].mxu1  ;;  %v2833_v3 = vmul.f32 -1.442695, %v1983_v0 }
 0x304   : > { %v3403_v39 = vpop.eup %3402  ;;  %3422 = vrcp.f32 %v1400_v6  ;;  %v1401_v23 = vadd.f32 1.0, %v3401_v12  ;;  %v4522_v53 = vpop.f32.mrb[55].mxu1 }
 0x305   : > { %v3405_v36 = vpop.eup %3404  ;;  %3424 = vrcp.f32 %v1403_v20  ;;  %v1731_v47 = vadd.f32 1.0, %v3403_v39  ;;  %v4526_v57 = vpop.permute.xlu1 %2169  ;;  %v2836_v20 = vmul.f32 -1.442695, %v3007_v44  ;;  %v2834_v63 = vmul.f32 -1.442695, %v4522_v53 }
 0x306   : > { %v3407_v56 = vpop.eup %3406  ;;  %3426 = vrcp.f32 %v1401_v23  ;;  %v1729_v50 = vadd.f32 1.0, %v3405_v36 }
 0x307   : > { %v3409_v22 = vpop.eup %3408  ;;  %3428 = vrcp.f32 %v1731_v47  ;;  %v1732_v45 = vadd.f32 1.0, %v3407_v56 }
 0x308   : > { %v3411_v11 = vpop.eup %3410  ;;  %3430 = vrcp.f32 %v1729_v50  ;;  %v1730_v38 = vadd.f32 1.0, %v3409_v22 }
 0x309   : > { %v3413_v52 = vpop.eup %3412  ;;  %3432 = vrcp.f32 %v1732_v45  ;;  %v2048_v1 = vadd.f32 1.0, %v3411_v11  ;;  %v4534_v27 = vpop.permute.xlu1 %2174 }
 0x30a   : > { %v3415_v34 = vpop.eup %3414  ;;  %3434 = vrcp.f32 %v1730_v38  ;;  %v2046_v41 = vadd.f32 1.0, %v3413_v52 }
 0x30b   : > { %v3417_v4 = vpop.eup %3416  ;;  %3436 = vrcp.f32 %v2048_v1  ;;  %v2049_v61 = vadd.f32 1.0, %v3415_v34 }
 0x30c   : > { %v3419_v15 = vpop.eup %3418  ;;  %3438 = vrcp.f32 %v2046_v41  ;;  %v2047_v8 = vadd.f32 1.0, %v3417_v4 }
 0x30d   : > { %v3421_v49 = vpop.eup %3420  ;;  %3440 = vrcp.f32 %v2049_v61  ;;  %v2056_v21 = vadd.f32 1.0, %v3419_v15  ;;  %v4549_v50 = vpop.permute.xlu1 %2179 }
 0x30e   : > { %v3423_v19 = vpop.eup %3422  ;;  %3442 = vrcp.f32 %v2047_v8 }
 0x30f   : > { %v3425_v60 = vpop.eup %3424  ;;  %3444 = vrcp.f32 %v2056_v21 }
 0x310   : > { %v3427_v30 = vpop.eup %3426  ;;  %3446 = vpow2.f32 %v2829_v13  ;;  %v2145_v13 = vpop.permute.xlu0 %2144 }
 0x311   : > { %v3429_v51 = vpop.eup %3428  ;;  %3448 = vpow2.f32 %v2832_v9  ;;  %v2185_v4 = vpop.permute.xlu1 %2184 }
 0x312   : > { %v3431_v58 = vpop.eup %3430  ;;  %v4536_v37 = vadd.f32 %v3429_v51, %v3421_v49  ;;  %3450 = vpow2.f32 %v2830_v55  ;;  %v5016_v51 = vlaneseq }
 0x313   : > { %v3433_v35 = vpop.eup %3432  ;;  %v4539_v26 = vadd.f32 %v3431_v58, %v3423_v19  ;;  %3452 = vpow2.f32 %v2827_v31 }
 0x314   : > { %v3435_v6 = vpop.eup %3434  ;;  %3454 = vpow2.f32 %v2825_v7  ;;  %v4542_v12 = vadd.f32 %v3433_v35, %v3425_v60 }
 0x315   : > { %v3437_v62 = vpop.eup %3436  ;;  %3456 = vpow2.f32 %v2828_v16  ;;  %v4544_v39 = vadd.f32 %v3435_v6, %v3427_v30  ;;  %v4559_v16 = vand.u32 127, %v5016_v51 }
 0x316   : > { %v3439_v23 = vpop.eup %3438  ;;  %v2096_v36 = vadd.f32 %v3437_v62, %v4476_v29  ;;  %3458 = vpow2.f32 %v2826_v40  ;;  %v2195_v40 = vpop.permute.xlu1 %2194 }
 0x317   : > { %v3441_v47 = vpop.eup %3440  ;;  %3460 = vpow2.f32 %v2835_v18  ;;  %v2094_v59 = vadd.f32 %v3439_v23, %v4478_v43  ;;  %v2190_v23 = vpop.permute.xlu0 %2189  ;;  %vm2352_vm0 = vcmp.lt.s32.totalorder %v4559_v16, 127 }
 0x318   : > { %v3443_v56 = vpop.eup %3442  ;;  %v2112_v0 = vmul.f32 0.33333334, %v2096_v36  ;;  %v2097_v22 = vadd.f32 %v3441_v47, %v4480_v46  ;;  %3462 = vpow2.f32 %v2833_v3 }
 0x319   : > { %v3445_v44 = vpop.eup %3444  ;;  %v2095_v45 = vadd.f32 %v3443_v56, %v4482_v24  ;;  %3464 = vpow2.f32 %v2836_v20  ;;  %v2110_v8 = vmul.f32 0.33333334, %v2094_v59 }
 0x31a   : > { %v3447_v11 = vpop.eup %3446  ;;  %v4554_v29 = vmul.f32 %v4494_v54, %v2112_v0  ;;  %v2104_v53 = vadd.f32 %v3445_v44, %v4502_v14  ;;  %3466 = vpow2.f32 %v2834_v63  ;;  %v2113_v55 = vmul.f32 0.33333334, %v2097_v22 }
 0x31b   : > { %v3449_v38 = vpop.eup %3448  ;;  %v2054_v43 = vadd.f32 1.0, %v3447_v11  ;;  %v2111_v30 = vmul.f32 0.33333334, %v2095_v45  ;;  %v4561_v18 = vmul.f32 %v2145_v13, %v2110_v8 }
 0x31c   : > { %v3451_v52 = vpop.eup %3450  ;;  %v2057_v1 = vadd.f32 1.0, %v3449_v38  ;;  %3468 = vrsqrt.f32 %v4554_v29  ;;  %v2120_v21 = vmul.f32 0.33333334, %v2104_v53  ;;  %v4566_v20 = vmul.f32 %v4514_v25, %v2113_v55 }
 0x31d   : > { %v3453_v34 = vpop.eup %3452  ;;  %3470 = vrcp.f32 %v2054_v43  ;;  %v2055_v46 = vadd.f32 1.0, %v3451_v52  ;;  %v4569_v63 = vmul.f32 %v4492_v32, %v2111_v30  ;;  %vm2254_vm1 = vcmp.eq.f32.partialorder %v4554_v29, inf }
 0x31e   : > { %v3455_v41 = vpop.eup %3454  ;;  %3472 = vrcp.f32 %v2057_v1  ;;  %v2052_v24 = vadd.f32 1.0, %v3453_v34  ;;  %v4563_v6 = vmul.f32 %v2195_v40, %v2120_v21  ;;  %v2257_v25 = vand.u32 2147483648, %v4554_v29  ;;  %v2200_v34 = vpop.permute.xlu0 %2199 }
 0x31f   : > { %v3457_v61 = vpop.eup %3456  ;;  %3474 = vrcp.f32 %v2055_v46  ;;  %v2050_v54 = vadd.f32 1.0, %v3455_v41  ;;  %vm2256_vm2 = vcmp.eq.f32.partialorder %v4554_v29, 0.0  ;;  %vm2240_vm3 = vcmp.eq.f32.partialorder %v4561_v18, inf }
 0x320   : > { %v3459_v15 = vpop.eup %3458  ;;  %3476 = vrcp.f32 %v2052_v24  ;;  %v2053_v14 = vadd.f32 1.0, %v3457_v61  ;;  %vm2242_vm4 = vcmp.eq.f32.partialorder %v4561_v18, 0.0  ;;  %vm2310_vm5 = vcmp.eq.f32.partialorder %v4563_v6, inf }
 0x321   : > { %v3461_v49 = vpop.eup %3460  ;;  %3478 = vrcp.f32 %v2050_v54  ;;  %v2051_v9 = vadd.f32 1.0, %v3459_v15  ;;  %vm2312_vm6 = vcmp.eq.f32.partialorder %v4563_v6, 0.0  ;;  %vm2261_vm7 = vcmp.eq.f32.partialorder %v4566_v20, inf }
 0x322   : > { %v3463_v19 = vpop.eup %3462  ;;  %3480 = vrcp.f32 %v2053_v14  ;;  %v2060_v60 = vadd.f32 1.0, %v3461_v49  ;;  %vm2263_vm8 = vcmp.eq.f32.partialorder %v4566_v20, 0.0  ;;  %vm2247_vm9 = vcmp.eq.f32.partialorder %v4569_v63, inf }
 0x323   : > { %v3465_v31 = vpop.eup %3464  ;;  %3482 = vrcp.f32 %v2051_v9  ;;  %v2058_v7 = vadd.f32 1.0, %v3463_v19  ;;  %v2313_v9 = vand.u32 2147483648, %v4563_v6  ;;  %v2250_v30 = vand.u32 2147483648, %v4569_v63 }
 0x324   : > { %v3467_v58 = vpop.eup %3466  ;;  %3484 = vrcp.f32 %v2060_v60  ;;  %v2061_v35 = vadd.f32 1.0, %v3465_v31  ;;  %v2264_v60 = vand.u32 2147483648, %v4566_v20  ;;  %vm2249_vm10 = vcmp.eq.f32.partialorder %v4569_v63, 0.0 }
 0x325   : > { %3486 = vrcp.f32 %v2058_v7  ;;  %v2059_v3 = vadd.f32 1.0, %v3467_v58 }
 0x326   : > { %v3469_v62 = vpop.eup %3468  ;;  %3488 = vrcp.f32 %v2061_v35 }
 0x327   : > { %v3471_v36 = vpop.eup %3470  ;;  %3490 = vrcp.f32 %v2059_v3  ;;  %v2253_v47 = vmul.f32 %v3469_v62, %v4554_v29 }
 0x328   : > { %v3473_v59 = vpop.eup %3472  ;;  %v2102_v56 = vadd.f32 %v3471_v36, %v4506_v17  ;;  %3492 = vrsqrt.f32 %v4561_v18 }
 0x329   : > { %v3475_v0 = vpop.eup %3474  ;;  %v2105_v22 = vadd.f32 %v3473_v59, %v4512_v42  ;;  %v2255_v32 = vsel %vm2254_vm1, %v4554_v29, %v2253_v47  ;;  %3494 = vrsqrt.f32 %v4563_v6  ;;  %v2210_v47 = vpop.permute.xlu0 %2209 }
 0x32a   : > { %v3477_v44 = vpop.eup %3476  ;;  %v2118_v45 = vmul.f32 0.33333334, %v2102_v56  ;;  %v2103_v11 = vadd.f32 %v3475_v0, %v4518_v48  ;;  %v4582_v17 = vsel %vm2256_vm2, %v2257_v25, %v2255_v32  ;;  %3496 = vrsqrt.f32 %v4566_v20  ;;  %v2205_v25 = vpop.permute.xlu1 %2204 }
 0x32b   : > { %v3479_v53 = vpop.eup %3478  ;;  %v2100_v38 = vadd.f32 %v3477_v44, %v4484_v2  ;;  %v2121_v43 = vmul.f32 0.33333334, %v2105_v22  ;;  %v2355_v42 = vsel %vm2352_vm0, %v4582_v17, -1.0  ;;  %3498 = vrsqrt.f32 %v4569_v63 }
 0x32c   : > { %v3481_v29 = vpop.eup %3480  ;;  %v4590_v52 = vmul.f32 %v2185_v4, %v2118_v45  ;;  %v2098_v1 = vadd.f32 %v3479_v53, %v4486_v5  ;;  %v2119_v48 = vmul.f32 0.33333334, %v2103_v11  ;;  %2373 = vmax.xlane.f32.xlu0 %v2355_v42  ;;  %v2243_v4 = vand.u32 2147483648, %v4561_v18 }
 0x32d   : > { %v3483_v46 = vpop.eup %3482  ;;  %v2101_v41 = vadd.f32 %v3481_v29, %v4488_v10  ;;  %v4594_v24 = vmul.f32 %v2200_v34, %v2121_v43  ;;  %v2116_v15 = vmul.f32 0.33333334, %v2100_v38 }
 0x32e   : > { %v3485_v2 = vpop.eup %3484  ;;  %v2099_v61 = vadd.f32 %v3483_v46, %v4490_v28  ;;  %v4599_v54 = vmul.f32 %v2190_v23, %v2119_v48  ;;  %3500 = vrsqrt.f32 %v4590_v52  ;;  %v2114_v8 = vmul.f32 0.33333334, %v2098_v1 }
 0x32f   : > { %v3487_v5 = vpop.eup %3486  ;;  %v2108_v14 = vadd.f32 %v3485_v2, %v4536_v37  ;;  %3502 = vrsqrt.f32 %v4594_v24  ;;  %v2117_v13 = vmul.f32 0.33333334, %v2101_v41  ;;  %v4616_v31 = vmul.f32 %v4534_v27, %v2116_v15  ;;  %v2220_v2 = vpop.permute.xlu0 %2219 }
 0x330   : > { %v3489_v10 = vpop.eup %3488  ;;  %v2106_v49 = vadd.f32 %v3487_v5, %v4539_v26  ;;  %3504 = vrsqrt.f32 %v4599_v54  ;;  %v2115_v19 = vmul.f32 0.33333334, %v2099_v61  ;;  %v4622_v51 = vmul.f32 %v4524_v33, %v2114_v8 }
 0x331   : > { %v3491_v28 = vpop.eup %3490  ;;  %v2109_v21 = vadd.f32 %v3489_v10, %v4542_v12  ;;  %v2124_v58 = vmul.f32 0.33333334, %v2108_v14  ;;  %vm2296_vm11 = vcmp.eq.f32.partialorder %v4590_v52, inf  ;;  %vm2298_vm12 = vcmp.eq.f32.partialorder %v4590_v52, 0.0 }
 0x332   : > { %v3493_v37 = vpop.eup %3492  ;;  %v2107_v55 = vadd.f32 %v3491_v28, %v4544_v39  ;;  %v4625_v39 = vmul.f32 %v4549_v50, %v2117_v13  ;;  %v2122_v3 = vmul.f32 0.33333334, %v2106_v49  ;;  %v4634_v33 = vmul.f32 %v4526_v57, %v2115_v19 }
 0x333   : > { %v3495_v26 = vpop.eup %3494  ;;  %v2239_v12 = vmul.f32 %v3493_v37, %v4561_v18  ;;  %v2125_v0 = vmul.f32 0.33333334, %v2109_v21  ;;  %v2299_v38 = vand.u32 2147483648, %v4590_v52  ;;  %vm2317_vm13 = vcmp.eq.f32.partialorder %v4594_v24, inf }
 0x334   : > { %v3497_v7 = vpop.eup %3496  ;;  %v2309_v40 = vmul.f32 %v3495_v26, %v4563_v6  ;;  %v2123_v27 = vmul.f32 0.33333334, %v2107_v55  ;;  %v4663_v45 = vmul.f32 %v2205_v25, %v2122_v3  ;;  %3506 = vrsqrt.f32 %v4616_v31 }
 0x335   : > { %v3499_v35 = vpop.eup %3498  ;;  %v2241_v62 = vsel %vm2240_vm3, %v4561_v18, %v2239_v12  ;;  %v2260_v23 = vmul.f32 %v3497_v7, %v4566_v20  ;;  %vm2319_vm14 = vcmp.eq.f32.partialorder %v4594_v24, 0.0  ;;  %vm2303_vm15 = vcmp.eq.f32.partialorder %v4599_v54, inf }
 0x336   : > { %v4638_v50 = vsel %vm2242_vm4, %v2243_v4, %v2241_v62  ;;  %v2311_v36 = vsel %vm2310_vm5, %v4563_v6, %v2309_v40  ;;  %v2246_v6 = vmul.f32 %v3499_v35, %v4569_v63  ;;  %v4665_v11 = vmul.f32 %v2210_v47, %v2123_v27 }
 0x337   : > { %v2353_v59 = vsel %vm2352_vm0, %v4638_v50, -1.0  ;;  %v4649_v56 = vsel %vm2312_vm6, %v2313_v9, %v2311_v36  ;;  %v2262_v57 = vsel %vm2261_vm7, %v4566_v20, %v2260_v23  ;;  %v2320_v20 = vand.u32 2147483648, %v4594_v24 }
 0x338   : > { %v3501_v18 = vpop.eup %3500  ;;  %2369 = vmax.xlane.f32.xlu1 %v2353_v59  ;;  %v2363_v22 = vsel %vm2352_vm0, %v4649_v56, -1.0  ;;  %v4660_v32 = vsel %vm2263_vm8, %v2264_v60, %v2262_v57  ;;  %v2248_v48 = vsel %vm2247_vm9, %v4569_v63, %v2246_v6  ;;  %3508 = vrsqrt.f32 %v4665_v11 }
 0x339   : > { %v3503_v44 = vpop.eup %3502  ;;  %2389 = vmax.xlane.f32.xlu0 %v2363_v22  ;;  %v2295_v53 = vmul.f32 %v3501_v18, %v4590_v52  ;;  %v2356_v29 = vsel %vm2352_vm0, %v4660_v32, -1.0  ;;  %v4697_v15 = vmul.f32 %v2220_v2, %v2125_v0  ;;  %v2306_v14 = vand.u32 2147483648, %v4599_v54 }
 0x33a   : > { %v3505_v43 = vpop.eup %3504  ;;  %v2316_v42 = vmul.f32 %v3503_v44, %v4594_v24  ;;  %3510 = vrsqrt.f32 %v4625_v39  ;;  %vm2305_vm1 = vcmp.eq.f32.partialorder %v4599_v54, 0.0  ;;  %vm2282_vm2 = vcmp.eq.f32.partialorder %v4616_v31, inf }
 0x33b   : > { %v2297_v1 = vsel %vm2296_vm11, %v4590_v52, %v2295_v53  ;;  %v2302_v34 = vmul.f32 %v3505_v43, %v4599_v54  ;;  %v2215_v52 = vpop.permute.xlu1 %2214  ;;  %3512 = vrsqrt.f32 %v4622_v51  ;;  %v2285_v21 = vand.u32 2147483648, %v4616_v31 }
 0x33c   : > { %2375 = vmax.xlane.f32.xlu1 %v2356_v29  ;;  %v4685_v46 = vsel %vm2298_vm12, %v2299_v38, %v2297_v1  ;;  %v2318_v41 = vsel %vm2317_vm13, %v4594_v24, %v2316_v42  ;;  %v4701_v24 = vsel %vm2249_vm10, %v2250_v30, %v2248_v48  ;;  %v4705_v10 = vmul.f32 %v2215_v52, %v2124_v58 }
 0x33d   : > { %v2361_v61 = vsel %vm2352_vm0, %v4685_v46, -1.0  ;;  %v4694_v4 = vsel %vm2319_vm14, %v2320_v20, %v2318_v41  ;;  %v2304_v5 = vsel %vm2303_vm15, %v4599_v54, %v2302_v34  ;;  %3514 = vrsqrt.f32 %v4634_v33 }
 0x33e   : > { %2385 = vmax.xlane.f32.xlu0 %v2361_v61  ;;  %v2364_v8 = vsel %vm2352_vm0, %v4694_v4, -1.0  ;;  %v4712_v13 = vsel %vm2305_vm1, %v2306_v14, %v2304_v5  ;;  %v2354_v63 = vsel %vm2352_vm0, %v4701_v24, -1.0  ;;  %3516 = vrsqrt.f32 %v4663_v45  ;;  %v3507_v49 = vpop.eup %3506 }
 0x33f   : > { %3518 = vrsqrt.f32 %v4697_v15  ;;  %v2362_v54 = vsel %vm2352_vm0, %v4712_v13, -1.0  ;;  %v2281_v28 = vmul.f32 %v3507_v49, %v4616_v31  ;;  %vm2284_vm3 = vcmp.eq.f32.partialorder %v4616_v31, 0.0 }
 0x340   : > { %2391 = vmax.xlane.f32.xlu1 %v2364_v8  ;;  %3520 = vrsqrt.f32 %v4705_v10  ;;  %vm2289_vm4 = vcmp.eq.f32.partialorder %v4625_v39, inf  ;;  %vm2291_vm5 = vcmp.eq.f32.partialorder %v4625_v39, 0.0  ;;  %v2292_v60 = vand.u32 2147483648, %v4625_v39 }
 0x341   : > { %v2283_v37 = vsel %vm2282_vm2, %v4616_v31, %v2281_v28  ;;  %vm2268_vm6 = vcmp.eq.f32.partialorder %v4622_v51, inf  ;;  %vm2270_vm7 = vcmp.eq.f32.partialorder %v4622_v51, 0.0  ;;  %v2271_v30 = vand.u32 2147483648, %v4622_v51 }
 0x342   : > { %2371 = vmax.xlane.f32.xlu0 %v2354_v63  ;;  %v3509_v9 = vpop.eup %3508  ;;  %v4731_v55 = vsel %vm2284_vm3, %v2285_v21, %v2283_v37  ;;  %vm2275_vm8 = vcmp.eq.f32.partialorder %v4634_v33, inf  ;;  %vm2277_vm9 = vcmp.eq.f32.partialorder %v4634_v33, 0.0  ;;  %v2278_v40 = vand.u32 2147483648, %v4634_v33 }
 0x343   : > { %v2359_v12 = vsel %vm2352_vm0, %v4731_v55, -1.0  ;;  %vm2324_vm10 = vcmp.eq.f32.partialorder %v4663_v45, inf  ;;  %vm2326_vm11 = vcmp.eq.f32.partialorder %v4663_v45, 0.0  ;;  %v2330_v62 = vmul.f32 %v3509_v9, %v4665_v11 }
 0x344   : > { %2387 = vmax.xlane.f32.xlu1 %v2362_v54  ;;  %v3511_v19 = vpop.eup %3510  ;;  %v2327_v57 = vand.u32 2147483648, %v4663_v45  ;;  %vm2331_vm12 = vcmp.eq.f32.partialorder %v4665_v11, inf  ;;  %vm2338_vm13 = vcmp.eq.f32.partialorder %v4705_v10, inf  ;;  %vm2333_vm14 = vcmp.eq.f32.partialorder %v4665_v11, 0.0 }
 0x345   : > { %v3513_v26 = vpop.eup %3512  ;;  %v2288_v31 = vmul.f32 %v3511_v19, %v4625_v39  ;;  %v2332_v38 = vsel %vm2331_vm12, %v4665_v11, %v2330_v62  ;;  %vm2340_vm15 = vcmp.eq.f32.partialorder %v4705_v10, 0.0  ;;  %vm2345_vm1 = vcmp.eq.f32.partialorder %v4697_v15, inf }
 0x346   : > { %2381 = vmax.xlane.f32.xlu0 %v2359_v12  ;;  %v2267_v58 = vmul.f32 %v3513_v26, %v4622_v51  ;;  %v2348_v34 = vand.u32 2147483648, %v4697_v15  ;;  %vm2347_vm2 = vcmp.eq.f32.partialorder %v4697_v15, 0.0 }
 0x347   : > { %v3515_v7 = vpop.eup %3514  ;;  %v2290_v3 = vsel %vm2289_vm4, %v4625_v39, %v2288_v31 }
 0x348   : > { %v3517_v35 = vpop.eup %3516  ;;  %v2274_v27 = vmul.f32 %v3515_v7, %v4634_v33  ;;  %v4754_v36 = vsel %vm2291_vm5, %v2292_v60, %v2290_v3  ;;  %v2269_v47 = vsel %vm2268_vm6, %v4622_v51, %v2267_v58 }
 0x349   : > { %v3519_v23 = vpop.eup %3518  ;;  %v2323_v59 = vmul.f32 %v3517_v35, %v4663_v45  ;;  %v2360_v25 = vsel %vm2352_vm0, %v4754_v36, -1.0  ;;  %v4766_v0 = vsel %vm2270_vm7, %v2271_v30, %v2269_v47 }
 0x34a   : > { %v3521_v18 = vpop.eup %3520  ;;  %v2276_v39 = vsel %vm2275_vm8, %v4634_v33, %v2274_v27  ;;  %2383 = vmax.xlane.f32.xlu1 %v2360_v25  ;;  %v2357_v22 = vsel %vm2352_vm0, %v4766_v0, -1.0  ;;  %v2344_v43 = vmul.f32 %v3519_v23, %v4697_v15  ;;  %v2334_v33 = vand.u32 2147483648, %v4665_v11 }
 0x34b   : > { %v4777_v6 = vsel %vm2277_vm9, %v2278_v40, %v2276_v39  ;;  %v2325_v51 = vsel %vm2324_vm10, %v4663_v45, %v2323_v59  ;;  %v2337_v44 = vmul.f32 %v3521_v18, %v4705_v10  ;;  %2377 = vmax.xlane.f32.xlu0 %v2357_v22  ;;  %v2341_v45 = vand.u32 2147483648, %v4705_v10 }
 0x34c   : > { %v4785_v53 = vsel %vm2326_vm11, %v2327_v57, %v2325_v51  ;;  %v2358_v20 = vsel %vm2352_vm0, %v4777_v6, -1.0  ;;  %v4800_v1 = vsel %vm2333_vm14, %v2334_v33, %v2332_v38  ;;  %v2346_v11 = vsel %vm2345_vm1, %v4697_v15, %v2344_v43 }
 0x34d   : > { %v2339_v42 = vsel %vm2338_vm13, %v4705_v10, %v2337_v44  ;;  %v2365_v29 = vsel %vm2352_vm0, %v4785_v53, -1.0  ;;  %v2366_v41 = vsel %vm2352_vm0, %v4800_v1, -1.0  ;;  %v4815_v61 = vsel %vm2347_vm2, %v2348_v34, %v2346_v11 }
 0x34e   : > { %2379 = vmax.xlane.f32.xlu1 %v2358_v20  ;;  %v4804_v48 = vsel %vm2340_vm15, %v2341_v45, %v2339_v42  ;;  %v2368_v5 = vsel %vm2352_vm0, %v4815_v61, -1.0 }
 0x34f   : > { %2393 = vmax.xlane.f32.xlu0 %v2365_v29  ;;  %v2367_v2 = vsel %vm2352_vm0, %v4804_v48, -1.0 }
 0x352   : > { %2395 = vmax.xlane.f32.xlu1 %v2366_v41 }
 0x353   : > { %2397 = vmax.xlane.f32.xlu0 %v2367_v2 }
 0x356   : > { %2399 = vmax.xlane.f32.xlu1 %v2368_v5 }
 0x357   : > { %3539 = shalt.err (!%p3536_p3)
}
 0x358   : > { %s3540_s21 = scalar_lea.hbm %s4826_s29, 2048  ;;  %s3544_s23 = scalar_lea.hbm %s4987_s7, 4096 }
 0x359   : > { %p3541_p4 = scmp.ne.s32.totalorder %s4826_s29, %s3540_s21  ;;  %p3545_p9 = scmp.lt.u32.totalorder %s4826_s29, %s4987_s7 }
 0x35a   : > { %p3546_p10 = scmp.lt.u32.totalorder %s3544_s23, %s3540_s21  ;;  %p3548_p12 = scmp.lt.u32.totalorder %s3540_s21, %s4826_s29 }
 0x35b   : > { %p3542_p7 = pnand %p3541_p4, %p3706_p5 }
 0x35c   : > { %p3547_p11 = por %p3546_p10, %p3545_p9 }
 0x35d   : > { %p3543_p8 = pneg %p3542_p7 }
 0x35e   : > { %p3549_p13 = por %p3548_p12, %p3547_p11 }
 0x360   : > { %p3550_p0 = pnand %p3549_p13, %p3543_p8 }
 0x362   : > { %3553 = shalt.err (!%p3550_p0)
}
 0x363   : > { %s3624_s13 = smov 128   ;;  %s3625_s18 = smov 8   ;;  %v3626_v52 = vmov 0.0  }
 0x364   : > { %3025 = dma.vmem_to_hbm [thread:$0]  (%p3706_p5), %s4829_s8, 2048, %s4826_s29, %s2524_s9, %s3624_s13, %s3624_s13, %s3625_s18  }
 0x365   : > { %s4863_s21 = scalar_lea.vmem [#allocation2], %s2692_s17  ;;  %s4931_s9 = scalar_lea.hbm %s4985_s5, %s2862_s15 }
 0x366   : > { %s2537_s17 = sshll.u32 %s4863_s21, 4  ;;  %s2514_s19 = scalar_lea.sflag [#allocation3], %s3938_s16  ;;  %s4933_s17 = int_to_ptr.vmem [resolvable:$true] %s2537_s17 }
 0x367   : > { %s3554_s22 = scalar_lea.vmem %s4933_s17, 2048  ;;  %s3627_s23 = smov [#allocation2]  }
 0x368   : > { %p3555_p1 = scmp.ne.s32.totalorder %s4933_s17, %s3554_s22  ;;  %s3558_s14 = sshll.u32 %s3627_s23, 4  ;;  %s3559_s14 = int_to_ptr.vmem [resolvable:$false] %s3558_s14 }
 0x369   : > { %s3560_s28 = scalar_lea.vmem %s3559_s14, 4096  ;;  %p3561_p4 = scmp.lt.s32.totalorder %s4933_s17, %s3559_s14 }
 0x36a   : > { %p3556_p2 = pnand %p3555_p1, %p3706_p5  ;;  %p3562_p7 = scmp.lt.s32.totalorder %s3560_s28, %s3554_s22 }
 0x36c   : > { %p3557_p3 = pneg %p3556_p2  ;;  %p3563_p8 = por %p3562_p7, %p3561_p4 }
 0x36e   : > { %p3564_p9 = pnand %p3563_p8, %p3557_p3 }
 0x3b9   : > { %v2374_v16 = vpop.xlane.xlu0 %2373 }
 0x3ba   : > { %vm2403_vm0 = vcmp.eq.f32.partialorder %v4582_v17, %v2374_v16 }
 0x3bb   : > { %v2839_v15 = vsel %vm2403_vm0, 1.0, %v3626_v52 }
 0x3bc   : > { %v2451_v14 = vmul.f32 %v2839_v15, %v4582_v17 }
 0x3be   : > { %2467 = vst [vmem:[%s4863_s21 + $0x10] sm:$0xff] %v2451_v14 }
 0x3c5   : > { %v2370_v10 = vpop.xlane.xlu1 %2369 }
 0x3c6   : > { %vm2401_vm3 = vcmp.eq.f32.partialorder %v4638_v50, %v2370_v10  ;;  %v2390_v8 = vpop.xlane.xlu0 %2389 }
 0x3c7   : > { %v2837_v63 = vsel %vm2401_vm3, 1.0, %v3626_v52  ;;  %vm2411_vm4 = vcmp.eq.f32.partialorder %v4649_v56, %v2390_v8 }
 0x3c8   : > { %v2449_v54 = vmul.f32 %v2837_v63, %v4638_v50  ;;  %v2847_v17 = vsel %vm2411_vm4, 1.0, %v3626_v52 }
 0x3c9   : > { %v2459_v49 = vmul.f32 %v2847_v17, %v4649_v56  ;;  %v2376_v28 = vpop.xlane.xlu1 %2375 }
 0x3ca   : > { %2465 = vst [vmem:[%s4863_s21] sm:$0xff] %v2449_v54  ;;  %vm2404_vm5 = vcmp.eq.f32.partialorder %v4660_v32, %v2376_v28 }
 0x3cb   : > { %2475 = vst [vmem:[%s4863_s21 + $0x50] sm:$0xff] %v2459_v49  ;;  %v2840_v21 = vsel %vm2404_vm5, 1.0, %v3626_v52  ;;  %v2386_v9 = vpop.xlane.xlu0 %2385 }
 0x3cc   : > { %v2452_v37 = vmul.f32 %v2840_v21, %v4660_v32  ;;  %vm2409_vm6 = vcmp.eq.f32.partialorder %v4685_v46, %v2386_v9 }
 0x3cd   : > { %v2845_v50 = vsel %vm2409_vm6, 1.0, %v3626_v52  ;;  %v2392_v19 = vpop.xlane.xlu1 %2391 }
 0x3ce   : > { %2468 = vst [vmem:[%s4863_s21 + $0x18] sm:$0xff] %v2452_v37  ;;  %v2457_v56 = vmul.f32 %v2845_v50, %v4685_v46  ;;  %vm2412_vm7 = vcmp.eq.f32.partialorder %v4694_v4, %v2392_v19 }
 0x3cf   : > { %v2848_v60 = vsel %vm2412_vm7, 1.0, %v3626_v52  ;;  %v2372_v26 = vpop.xlane.xlu0 %2371 }
 0x3d0   : > { %2473 = vst [vmem:[%s4863_s21 + $0x40] sm:$0xff] %v2457_v56  ;;  %v2460_v12 = vmul.f32 %v2848_v60, %v4694_v4  ;;  %vm2402_vm8 = vcmp.eq.f32.partialorder %v4701_v24, %v2372_v26 }
 0x3d1   : > { %v2838_v32 = vsel %vm2402_vm8, 1.0, %v3626_v52  ;;  %v2388_v31 = vpop.xlane.xlu1 %2387 }
 0x3d2   : > { %2476 = vst [vmem:[%s4863_s21 + $0x58] sm:$0xff] %v2460_v12  ;;  %v2450_v30 = vmul.f32 %v2838_v32, %v4701_v24  ;;  %vm2410_vm9 = vcmp.eq.f32.partialorder %v4712_v13, %v2388_v31 }
 0x3d3   : > { %v2846_v46 = vsel %vm2410_vm9, 1.0, %v3626_v52  ;;  %v2382_v58 = vpop.xlane.xlu0 %2381 }
 0x3d4   : > { %2466 = vst [vmem:[%s4863_s21 + $0x8] sm:$0xff] %v2450_v30  ;;  %v2458_v7 = vmul.f32 %v2846_v46, %v4712_v13  ;;  %vm2407_vm10 = vcmp.eq.f32.partialorder %v4731_v55, %v2382_v58 }
 0x3d5   : > { %v2843_v4 = vsel %vm2407_vm10, 1.0, %v3626_v52 }
 0x3d6   : > { %2474 = vst [vmem:[%s4863_s21 + $0x48] sm:$0xff] %v2458_v7  ;;  %v2455_v40 = vmul.f32 %v2843_v4, %v4731_v55 }
 0x3d7   : > { %v2384_v35 = vpop.xlane.xlu1 %2383 }
 0x3d8   : > { %2471 = vst [vmem:[%s4863_s21 + $0x30] sm:$0xff] %v2455_v40  ;;  %vm2408_vm11 = vcmp.eq.f32.partialorder %v4754_v36, %v2384_v35  ;;  %v2378_v24 = vpop.xlane.xlu0 %2377 }
 0x3d9   : > { %v2844_v3 = vsel %vm2408_vm11, 1.0, %v3626_v52  ;;  %vm2405_vm12 = vcmp.eq.f32.partialorder %v4766_v0, %v2378_v24 }
 0x3da   : > { %v2456_v13 = vmul.f32 %v2844_v3, %v4754_v36  ;;  %v2841_v27 = vsel %vm2405_vm12, 1.0, %v3626_v52 }
 0x3db   : > { %v2453_v62 = vmul.f32 %v2841_v27, %v4766_v0  ;;  %v2380_v23 = vpop.xlane.xlu1 %2379 }
 0x3dc   : > { %2472 = vst [vmem:[%s4863_s21 + $0x38] sm:$0xff] %v2456_v13  ;;  %vm2406_vm13 = vcmp.eq.f32.partialorder %v4777_v6, %v2380_v23  ;;  %v2394_v55 = vpop.xlane.xlu0 %2393 }
 0x3dd   : > { %2469 = vst [vmem:[%s4863_s21 + $0x20] sm:$0xff] %v2453_v62  ;;  %v2842_v47 = vsel %vm2406_vm13, 1.0, %v3626_v52  ;;  %vm2413_vm14 = vcmp.eq.f32.partialorder %v4785_v53, %v2394_v55 }
 0x3de   : > { %v2454_v59 = vmul.f32 %v2842_v47, %v4777_v6  ;;  %v2849_v36 = vsel %vm2413_vm14, 1.0, %v3626_v52 }
 0x3df   : > { %v2461_v57 = vmul.f32 %v2849_v36, %v4785_v53  ;;  %v2396_v18 = vpop.xlane.xlu1 %2395 }
 0x3e0   : > { %2470 = vst [vmem:[%s4863_s21 + $0x28] sm:$0xff] %v2454_v59  ;;  %vm2414_vm15 = vcmp.eq.f32.partialorder %v4800_v1, %v2396_v18  ;;  %v2398_v25 = vpop.xlane.xlu0 %2397 }
 0x3e1   : > { %2477 = vst [vmem:[%s4863_s21 + $0x60] sm:$0xff] %v2461_v57  ;;  %v2850_v0 = vsel %vm2414_vm15, 1.0, %v3626_v52  ;;  %vm2415_vm1 = vcmp.eq.f32.partialorder %v4804_v48, %v2398_v25 }
 0x3e2   : > { %v2462_v39 = vmul.f32 %v2850_v0, %v4800_v1  ;;  %v2851_v22 = vsel %vm2415_vm1, 1.0, %v3626_v52 }
 0x3e3   : > { %v2463_v6 = vmul.f32 %v2851_v22, %v4804_v48  ;;  %v2400_v51 = vpop.xlane.xlu1 %2399 }
 0x3e4   : > { %2478 = vst [vmem:[%s4863_s21 + $0x68] sm:$0xff] %v2462_v39  ;;  %vm2416_vm2 = vcmp.eq.f32.partialorder %v4815_v61, %v2400_v51 }
 0x3e5   : > { %2479 = vst [vmem:[%s4863_s21 + $0x70] sm:$0xff] %v2463_v6  ;;  %v2852_v44 = vsel %vm2416_vm2, 1.0, %v3626_v52 }
 0x3e6   : > { %v2464_v53 = vmul.f32 %v2852_v44, %v4815_v61 }
 0x3e8   : > { %2480 = vst [vmem:[%s4863_s21 + $0x78] sm:$0xff] %v2464_v53 }
 0x3e9   : > { %3567 = shalt.err (!%p3564_p9)
}
 0x3ea   : > { %s3568_s15 = scalar_lea.hbm %s4931_s9, 2048  ;;  %s3572_s29 = scalar_lea.hbm %s4985_s5, 4096 }
 0x3eb   : > { %p3569_p10 = scmp.ne.s32.totalorder %s4931_s9, %s3568_s15  ;;  %p3573_p13 = scmp.lt.u32.totalorder %s4931_s9, %s4985_s5 }
 0x3ec   : > { %p3574_p0 = scmp.lt.u32.totalorder %s3572_s29, %s3568_s15  ;;  %p3576_p2 = scmp.lt.u32.totalorder %s3568_s15, %s4931_s9 }
 0x3ed   : > { %p3570_p11 = pnand %p3569_p10, %p3706_p5 }
 0x3ee   : > { %p3575_p1 = por %p3574_p0, %p3573_p13 }
 0x3ef   : > { %p3571_p12 = pneg %p3570_p11 }
 0x3f0   : > { %p3577_p3 = por %p3576_p2, %p3575_p1 }
 0x3f2   : > { %p3578_p4 = pnand %p3577_p3, %p3571_p12 }
 0x3f4   : > { %3581 = shalt.err (!%p3578_p4)
}
 0x3f5   : > { %3024 = dma.vmem_to_hbm [thread:$0]  (%p3706_p5), %s4933_s17, 2048, %s4931_s9, %s2514_s19, %s3624_s13, %s3624_s13, %s3625_s18  }
 0x3f6 PF: > { %p3035_p7 = scmp.ge.s32.totalorder %s3620_s27, 2  ;;  %s2572_s22 = sand.u32 1, %s3608_s24  }
 0x3f7   : > { %s2573_s14 = scalar_lea.sflag [#allocation3], %s2572_s22 }
 0x3f8   : > { %p3029_p8 = pnand %p3035_p7, %p3710_p6 }
 0x3fa   : > { %3599 = dma.done.wait (!%p3029_p8), %s2573_s14, 2048  }
 0x3fb   : > { %3601 = vsyncadd (!%p3029_p8), %s2573_s14, 4294965248  ;;  %s2590_s11 = scalar_lea.sflag [#allocation5], %s2572_s22 }
 0x3fc   : > { %3603 = dma.done.wait (!%p3029_p8), %s2590_s11, 2048  }
 0x3fd   : > { %3605 = vsyncadd (!%p3029_p8), %s2590_s11, 4294965248  ;;  %p21_p5 = scmp.ge.s32.totalorder %s3693_s30, 4   ;;  %s5017_s24 = smov %s3612_s25 }
 0x3fe   : > { %s5018_s25 = smov %s3616_s26  ;;  %s5019_s26 = smov %s3704_s10 }
 0x3ff   : > { %s5020_s27 = smov %s3693_s30  ;;  %23 = sbr.rel (!%p21_p5) target bundleno = 5 (0x5), region = 107 }
 0x406   :  { %2595 = vsyncpa [#allocation3], 1 }
 0x407   :  { %2597 = vsyncpa [#allocation3 + $0x1], 1 }
 0x408   :  { %2598 = vsyncpa [#allocation5], 1 }
 0x409   :  { %2600 = vsyncpa [#allocation5 + $0x1], 1 }

</bundles_post_ra>
